<compile_context>
chip_gen: v7x
topology: tpu7x:2x2x1
jax: 0.10.0
libtpu: 0.0.40
codegen_flags: <defaults>
</compile_context>

<pallas_src>
from functools import partial

import jax
import jax.numpy as jnp
from jax import lax
from jax.experimental import pallas as pl
from jax.experimental.pallas import tpu as pltpu


INPUT_SIZE = 16
HIDDEN_SIZE = 64
NUM_LAYERS = 2       # hard-coded as two explicit stacked layers in the kernel
SUBLANE = 8


def _round_up(x, m):
    return (x + m - 1) // m * m


def _lstm_fc_kernel(x_ref,       # (Tp, Bb, I)  time-major input block (fp32)
                    wih0_ref,    # (I, 4H)   bf16
                    whh0_ref,    # (H, 4H)   bf16
                    b0_ref,      # (1, 4H)   fp32  b_ih0 + b_hh0
                    wih1_ref,    # (H, 4H)   bf16
                    whh1_ref,    # (H, 4H)   bf16
                    b1_ref,      # (1, 4H)   fp32  b_ih1 + b_hh1
                    wfc_ref,     # (1, H)    fp32
                    bfc_ref,     # (1, 1)    fp32
                    out_ref,     # (Bb, 1)   sigmoid(logits)
                    xproj_ref,   # scratch (t_chunk*Bb, 4H) fp32
                    *, t_valid):
    Tp, Bb, I = x_ref.shape
    H = whh0_ref.shape[0]                      # 64
    t_chunk = xproj_ref.shape[0] // Bb
    n_chunks = Tp // t_chunk
    needs_mask = (Tp != t_valid)
    bf16 = jnp.bfloat16

    # Load weights / biases once (hoisted out of the recurrence).
    wih0 = wih0_ref[...]
    whh0 = whh0_ref[...]
    wih1 = wih1_ref[...]
    whh1 = whh1_ref[...]
    b0 = b0_ref[...]
    b1 = b1_ref[...]

    # PyTorch gate order [i, f, g, o]: lanes [0:2H) are sigmoid, lanes
    # [2H:4H) are tanh (first H) | sigmoid (last H).  Hoisted iota mask.
    lane = lax.broadcasted_iota(jnp.int32, (Bb, 2 * H), 1)
    tanh_mask = lane < H

    def gates_to_state(g, c_prev):
        a_if = jax.nn.sigmoid(g[:, :2 * H])                       # [i | f]
        g_go = g[:, 2 * H:]
        a_go = jnp.where(tanh_mask, jnp.tanh(g_go), jax.nn.sigmoid(g_go))  # [g | o]
        i_g = a_if[:, :H]
        f_g = a_if[:, H:]
        g_g = a_go[:, :H]
        o_g = a_go[:, H:]
        c_new = f_g * c_prev + i_g * g_g
        h_new = o_g * jnp.tanh(c_new)
        return h_new, c_new

    def step(t, carry, t0):
        h0, c0, h1, c1 = carry

        # Layer-1 recurrent half: depends only on the previous step's h1, so
        # it can overlap layer 0's recurrent matmul + activations.
        g1_rec = jnp.dot(h1.astype(bf16), whh1,
                         preferred_element_type=jnp.float32)

        row = pl.multiple_of(t * Bb, SUBLANE)
        xp = xproj_ref[pl.ds(row, Bb), :]                          # includes +b0

        # Layer 0: only the recurrent matmul is on the serial chain.
        g0 = xp + jnp.dot(h0.astype(bf16), whh0,
                          preferred_element_type=jnp.float32)
        h0n, c0n = gates_to_state(g0, c0)

        # Layer 1: add the input half once h0n is ready.
        g1 = g1_rec + b1 + jnp.dot(h0n.astype(bf16), wih1,
                                   preferred_element_type=jnp.float32)
        h1n, c1n = gates_to_state(g1, c1)

        if needs_mask:
            valid = (t0 + t) < t_valid
            h0n = jnp.where(valid, h0n, h0)
            c0n = jnp.where(valid, c0n, c0)
            h1n = jnp.where(valid, h1n, h1)
            c1n = jnp.where(valid, c1n, c1)
        return (h0n, c0n, h1n, c1n)

    unroll = t_chunk if t_chunk <= 16 else 8

    def chunk(ci, carry):
        t0 = ci * t_chunk
        if not isinstance(t0, int):
            t0 = pl.multiple_of(t0, t_chunk)
        # Hoisted layer-0 input projection for this chunk: one wide MXU op
        # off the serial per-timestep chain.
        xc = x_ref[pl.ds(t0, t_chunk), :, :].reshape(t_chunk * Bb, I)
        xproj_ref[...] = (
            jnp.dot(xc.astype(bf16), wih0, preferred_element_type=jnp.float32)
            + b0)
        return lax.fori_loop(0, t_chunk, lambda t, c: step(t, c, t0), carry,
                             unroll=unroll)

    zeros = jnp.zeros((Bb, H), dtype=jnp.float32)
    carry0 = (zeros, zeros, zeros, zeros)
    if n_chunks == 1:
        carry = chunk(0, carry0)
    else:
        carry = lax.fori_loop(0, n_chunks, chunk, carry0)
    h1 = carry[2]

    # fc head: N=1 matmul replaced by a VPU multiply + lane reduction.
    logits = jnp.sum(h1 * wfc_ref[...], axis=1, keepdims=True) + bfc_ref[...]
    out_ref[...] = jax.nn.sigmoid(logits)


def _prepare_weights(params):
    """Dense (stride-H) gate layout; weight matrices in bf16, biases in fp32."""
    f32, bf16 = jnp.float32, jnp.bfloat16
    wih0 = params["w_ih0"].T.astype(bf16)                                 # (I, 4H)
    whh0 = params["w_hh0"].T.astype(bf16)                                 # (H, 4H)
    b0 = (params["b_ih0"] + params["b_hh0"]).reshape(1, -1).astype(f32)   # (1, 4H)
    wih1 = params["w_ih1"].T.astype(bf16)                                 # (H, 4H)
    whh1 = params["w_hh1"].T.astype(bf16)                                 # (H, 4H)
    b1 = (params["b_ih1"] + params["b_hh1"]).reshape(1, -1).astype(f32)   # (1, 4H)
    wfc = params["w_fc"].astype(f32)                                      # (1, H)
    bfc = params["b_fc"].reshape(1, 1).astype(f32)                        # (1, 1)
    return wih0, whh0, b0, wih1, whh1, b1, wfc, bfc


def _vmem_limit_bytes():
    try:
        cap = int(pltpu.get_tpu_info().vmem_capacity_bytes)
    except Exception:
        cap = 64 * 1024 * 1024        # conservative (v7x-sized) fallback
    return int(min(cap * 3 // 4, 96 * 1024 * 1024))


def fight_lstm_forward(x, params, *, b_block=512, t_chunk_max=32):
    """x: (B, T, input_size) float32 (batch_first, like PyTorch). Returns (B,)."""
    B, T, I = x.shape
    H = params["w_hh0"].shape[1]
    G = 4 * H
    wih0, whh0, b0, wih1, whh1, b1, wfc, bfc = _prepare_weights(params)

    # Input-projection chunk length (bounds scratch independently of T).
    t_chunk = min(T, t_chunk_max)
    t_pad = _round_up(T, t_chunk)

    # VMEM budgeting: xproj scratch + double-buffered x block per batch row.
    vmem_limit = _vmem_limit_bytes()
    budget = vmem_limit // 2
    bytes_per_row = t_chunk * G * 4 + t_pad * I * 4 * 2
    cap = max(SUBLANE, budget // bytes_per_row // SUBLANE * SUBLANE)
    b_blk_max = max(SUBLANE, min(b_block, cap))

    # Balanced batch blocks (pad < one block); >=2 blocks when possible so
    # both v7x TensorCores get work under dimension_semantics=("parallel",).
    b8 = _round_up(B, SUBLANE)
    n_blocks = pl.cdiv(b8, b_blk_max)
    if b8 >= 2 * SUBLANE:
        n_blocks = max(n_blocks, 2)
    b_blk = _round_up(pl.cdiv(b8, n_blocks), SUBLANE)
    n_blocks = pl.cdiv(b8, b_blk)
    b_pad = n_blocks * b_blk

    # Time-major input, padded along T (masked in-kernel) and batch.
    x_tbi = jnp.transpose(x, (1, 0, 2)).astype(jnp.float32)          # (T, B, I)
    x_tbi = jnp.pad(x_tbi, ((0, t_pad - T), (0, b_pad - B), (0, 0)))

    def full_spec(a):
        return pl.BlockSpec(a.shape, lambda b: (0,) * a.ndim)

    kernel = partial(_lstm_fc_kernel, t_valid=T)

    out = pl.pallas_call(
        kernel,
        out_shape=jax.ShapeDtypeStruct((b_pad, 1), jnp.float32),
        grid=(n_blocks,),
        in_specs=[
            pl.BlockSpec((t_pad, b_blk, I), lambda b: (0, b, 0)),
            full_spec(wih0), full_spec(whh0), full_spec(b0),
            full_spec(wih1), full_spec(whh1), full_spec(b1),
            full_spec(wfc), full_spec(bfc),
        ],
        out_specs=pl.BlockSpec((b_blk, 1), lambda b: (b, 0)),
        scratch_shapes=[pltpu.VMEM((t_chunk * b_blk, G), jnp.float32)],
        compiler_params=pltpu.CompilerParams(
            dimension_semantics=("parallel",),
            vmem_limit_bytes=vmem_limit),
    )(x_tbi, wih0, whh0, b0, wih1, whh1, b1, wfc, bfc)

    # torch.sigmoid(out).squeeze()  (drop padded batch rows).
    return jnp.squeeze(out[:B], axis=-1)


def init_params(key, input_size=INPUT_SIZE, hidden_size=HIDDEN_SIZE):
    """Deterministic init matching PyTorch shapes: U(-1/sqrt(H), 1/sqrt(H))."""
    H = hidden_size
    bound = 1.0 / (H ** 0.5)
    keys = jax.random.split(key, 10)

    def u(k, shape):
        return jax.random.uniform(k, shape, jnp.float32, -bound, bound)

    return {
        # layer 0
        "w_ih0": u(keys[0], (4 * H, input_size)),
        "w_hh0": u(keys[1], (4 * H, H)),
        "b_ih0": u(keys[2], (4 * H,)),
        "b_hh0": u(keys[3], (4 * H,)),
        # layer 1
        "w_ih1": u(keys[4], (4 * H, H)),
        "w_hh1": u(keys[5], (4 * H, H)),
        "b_ih1": u(keys[6], (4 * H,)),
        "b_hh1": u(keys[7], (4 * H,)),
        # fc
        "w_fc": u(keys[8], (1, H)),
        "b_fc": u(keys[9], (1,)),
    }


def _reference_forward(x, params):
    """Pure-JAX fp32 reference of the same LSTM math (for a sanity check)."""
    B, T, I = x.shape
    H = HIDDEN_SIZE

    def cell(x_t, h, c, w_ih, w_hh, b_ih, b_hh):
        g = x_t @ w_ih.T + h @ w_hh.T + b_ih + b_hh
        i = jax.nn.sigmoid(g[:, 0 * H:1 * H])
        f = jax.nn.sigmoid(g[:, 1 * H:2 * H])
        gg = jnp.tanh(g[:, 2 * H:3 * H])
        o = jax.nn.sigmoid(g[:, 3 * H:4 * H])
        c_new = f * c + i * gg
        return o * jnp.tanh(c_new), c_new

    h0 = c0 = h1 = c1 = jnp.zeros((B, H), jnp.float32)
    for t in range(T):
        h0, c0 = cell(x[:, t, :], h0, c0,
                      params["w_ih0"], params["w_hh0"], params["b_ih0"], params["b_hh0"])
        h1, c1 = cell(h0, h1, c1,
                      params["w_ih1"], params["w_hh1"], params["b_ih1"], params["b_hh1"])
    logits = h1 @ params["w_fc"].T + params["b_fc"]
    return jnp.squeeze(jax.nn.sigmoid(logits), axis=-1)


if __name__ == "__main__":
    B, T = 2, 8
    key = jax.random.PRNGKey(0)
    k_x, k_p = jax.random.split(key)

    x = jax.random.normal(k_x, (B, T, INPUT_SIZE), dtype=jnp.float32)
    params = init_params(k_p)

    out = jax.jit(fight_lstm_forward)(x, params)
    out = jax.block_until_ready(out)

    ref = _reference_forward(x, params)
    assert out.shape == (B,)
    # bf16 MXU operands vs fp32 reference: loosened tolerance.
    assert jnp.allclose(out, ref, atol=3e-2, rtol=3e-2), (out, ref)

    print("KERNEL_OK")
</pallas_src>

<mosaic_0001>
module attributes {stable_mosaic.version = 11 : i64} {
  func.func @_lstm_fc_kernel(%arg0: i32, %arg1: memref<8x8x16xf32, #tpu.memory_space<vmem>>, %arg2: memref<16x256xbf16, #tpu.memory_space<vmem>>, %arg3: memref<64x256xbf16, #tpu.memory_space<vmem>>, %arg4: memref<1x256xf32, #tpu.memory_space<vmem>>, %arg5: memref<64x256xbf16, #tpu.memory_space<vmem>>, %arg6: memref<64x256xbf16, #tpu.memory_space<vmem>>, %arg7: memref<1x256xf32, #tpu.memory_space<vmem>>, %arg8: memref<1x64xf32, #tpu.memory_space<vmem>>, %arg9: memref<1x1xf32, #tpu.memory_space<vmem>>, %arg10: memref<8x1xf32, #tpu.memory_space<vmem>>, %arg11: memref<64x256xf32, #tpu.memory_space<vmem>>) attributes {dimension_semantics = [#tpu.dimension_semantics<parallel>], iteration_bounds = array<i64: 1>, scalar_prefetch = 0 : i64, scratch_operands = 1 : i64, tpu.core_type = #tpu.core_type<tc>, window_params = [{transform_indices = @transform_0, window_bounds = array<i64: 8, 8, 16>}, {pipeline_mode = #tpu.pipeline_mode<synchronous>, transform_indices = @transform_1, window_bounds = array<i64: 16, 256>}, {pipeline_mode = #tpu.pipeline_mode<synchronous>, transform_indices = @transform_2, window_bounds = array<i64: 64, 256>}, {pipeline_mode = #tpu.pipeline_mode<synchronous>, transform_indices = @transform_3, window_bounds = array<i64: 1, 256>}, {pipeline_mode = #tpu.pipeline_mode<synchronous>, transform_indices = @transform_4, window_bounds = array<i64: 64, 256>}, {pipeline_mode = #tpu.pipeline_mode<synchronous>, transform_indices = @transform_5, window_bounds = array<i64: 64, 256>}, {pipeline_mode = #tpu.pipeline_mode<synchronous>, transform_indices = @transform_6, window_bounds = array<i64: 1, 256>}, {pipeline_mode = #tpu.pipeline_mode<synchronous>, transform_indices = @transform_7, window_bounds = array<i64: 1, 64>}, {pipeline_mode = #tpu.pipeline_mode<synchronous>, transform_indices = @transform_8, window_bounds = array<i64: 1, 1>}, {transform_indices = @transform_9, window_bounds = array<i64: 8, 1>}]} {
    %c0 = arith.constant 0 : index
    %c0_0 = arith.constant 0 : index
    %0 = vector.load %arg2[%c0, %c0_0] : memref<16x256xbf16, #tpu.memory_space<vmem>>, vector<16x256xbf16>
    %c0_1 = arith.constant 0 : index
    %c0_2 = arith.constant 0 : index
    %1 = vector.load %arg3[%c0_1, %c0_2] : memref<64x256xbf16, #tpu.memory_space<vmem>>, vector<64x256xbf16>
    %c0_3 = arith.constant 0 : index
    %c0_4 = arith.constant 0 : index
    %2 = vector.load %arg5[%c0_3, %c0_4] : memref<64x256xbf16, #tpu.memory_space<vmem>>, vector<64x256xbf16>
    %c0_5 = arith.constant 0 : index
    %c0_6 = arith.constant 0 : index
    %3 = vector.load %arg6[%c0_5, %c0_6] : memref<64x256xbf16, #tpu.memory_space<vmem>>, vector<64x256xbf16>
    %c0_7 = arith.constant 0 : index
    %c0_8 = arith.constant 0 : index
    %4 = vector.load %arg4[%c0_7, %c0_8] : memref<1x256xf32, #tpu.memory_space<vmem>>, vector<1x256xf32>
    %c0_9 = arith.constant 0 : index
    %c0_10 = arith.constant 0 : index
    %5 = vector.load %arg7[%c0_9, %c0_10] : memref<1x256xf32, #tpu.memory_space<vmem>>, vector<1x256xf32>
    %6 = tpu.iota {dimensions = array<i32: 1>} : vector<8x128xi32>
    %c64_i32 = arith.constant 64 : i32
    %7 = vector.broadcast %c64_i32 : i32 to vector<8x128xi32>
    %8 = arith.cmpi slt, %6, %7 : vector<8x128xi32>
    %cst = arith.constant 0.000000e+00 : f32
    %9 = vector.broadcast %cst : f32 to vector<8x64xf32>
    %c0_11 = arith.constant 0 : index
    %c0_12 = arith.constant 0 : index
    %c0_13 = arith.constant 0 : index
    %10 = vector.load %arg1[%c0_11, %c0_12, %c0_13] : memref<8x8x16xf32, #tpu.memory_space<vmem>>, vector<8x8x16xf32>
    %11 = vector.shape_cast %10 : vector<8x8x16xf32> to vector<64x16xf32>
    %12 = arith.truncf %11 : vector<64x16xf32> to vector<64x16xbf16>
    %cst_14 = arith.constant dense<0.000000e+00> : vector<64x256xf32>
    %13 = tpu.matmul %12, %0, %cst_14 {dimension_numbers = #tpu.dot_dimension_numbers<[1], [0], [0], [1], [0, 0, 1, 1], [], []>} : vector<64x16xbf16>, vector<16x256xbf16>, vector<64x256xf32> -> vector<64x256xf32>
    %14 = vector.broadcast %4 : vector<1x256xf32> to vector<64x256xf32>
    %15 = arith.addf %13, %14 : vector<64x256xf32>
    %c0_15 = arith.constant 0 : index
    %c0_16 = arith.constant 0 : index
    %16 = vector.load %arg11[%c0_15, %c0_16] : memref<64x256xf32, #tpu.memory_space<vmem>>, vector<64x256xf32>
    tpu.vector_store %arg11[%c0_15, %c0_16], %15 {strides = array<i32>} : memref<64x256xf32, #tpu.memory_space<vmem>>, vector<64x256xf32>,
    %c0_i32 = arith.constant 0 : i32
    %17 = arith.truncf %9 : vector<8x64xf32> to vector<8x64xbf16>
    %cst_17 = arith.constant dense<0.000000e+00> : vector<8x256xf32>
    %18 = tpu.matmul %17, %3, %cst_17 {dimension_numbers = #tpu.dot_dimension_numbers<[1], [0], [0], [1], [0, 0, 1, 1], [], []>} : vector<8x64xbf16>, vector<64x256xbf16>, vector<8x256xf32> -> vector<8x256xf32>
    %c8_i32 = arith.constant 8 : i32
    %19 = arith.muli %c0_i32, %c8_i32 : i32
    %20 = tpu.assume_multiple %19, 8 : i32
    %21 = arith.index_cast %20 : i32 to index
    %c0_18 = arith.constant 0 : index
    %22 = vector.load %arg11[%21, %c0_18] : memref<64x256xf32, #tpu.memory_space<vmem>>, vector<8x256xf32>
    %23 = arith.truncf %9 : vector<8x64xf32> to vector<8x64xbf16>
    %cst_19 = arith.constant dense<0.000000e+00> : vector<8x256xf32>
    %24 = tpu.matmul %23, %1, %cst_19 {dimension_numbers = #tpu.dot_dimension_numbers<[1], [0], [0], [1], [0, 0, 1, 1], [], []>} : vector<8x64xbf16>, vector<64x256xbf16>, vector<8x256xf32> -> vector<8x256xf32>
    %25 = arith.addf %22, %24 : vector<8x256xf32>
    %26 = vector.extract_strided_slice %25 {offsets = [0, 0], sizes = [8, 128], strides = [1, 1]} : vector<8x256xf32> to vector<8x128xf32>
    %27 = arith.negf %26 : vector<8x128xf32>
    %28 = math.exp %27 : vector<8x128xf32>
    %cst_20 = arith.constant 1.000000e+00 : f32
    %29 = vector.broadcast %cst_20 : f32 to vector<8x128xf32>
    %30 = arith.addf %29, %28 : vector<8x128xf32>
    %31 = arith.divf %29, %30 : vector<8x128xf32>
    %32 = vector.extract_strided_slice %25 {offsets = [0, 128], sizes = [8, 128], strides = [1, 1]} : vector<8x256xf32> to vector<8x128xf32>
    %33 = math.tanh %32 : vector<8x128xf32>
    %34 = arith.negf %32 : vector<8x128xf32>
    %35 = math.exp %34 : vector<8x128xf32>
    %cst_21 = arith.constant 1.000000e+00 : f32
    %36 = vector.broadcast %cst_21 : f32 to vector<8x128xf32>
    %37 = arith.addf %36, %35 : vector<8x128xf32>
    %38 = arith.divf %36, %37 : vector<8x128xf32>
    %39 = arith.select %8, %33, %38 : vector<8x128xi1>, vector<8x128xf32>
    %40 = vector.extract_strided_slice %31 {offsets = [0, 0], sizes = [8, 64], strides = [1, 1]} : vector<8x128xf32> to vector<8x64xf32>
    %41 = vector.extract_strided_slice %31 {offsets = [0, 64], sizes = [8, 64], strides = [1, 1]} : vector<8x128xf32> to vector<8x64xf32>
    %42 = vector.extract_strided_slice %39 {offsets = [0, 0], sizes = [8, 64], strides = [1, 1]} : vector<8x128xf32> to vector<8x64xf32>
    %43 = vector.extract_strided_slice %39 {offsets = [0, 64], sizes = [8, 64], strides = [1, 1]} : vector<8x128xf32> to vector<8x64xf32>
    %44 = arith.mulf %41, %9 : vector<8x64xf32>
    %45 = arith.mulf %40, %42 : vector<8x64xf32>
    %46 = arith.addf %44, %45 : vector<8x64xf32>
    %47 = math.tanh %46 : vector<8x64xf32>
    %48 = arith.mulf %43, %47 : vector<8x64xf32>
    %49 = vector.broadcast %5 : vector<1x256xf32> to vector<8x256xf32>
    %50 = arith.addf %18, %49 : vector<8x256xf32>
    %51 = arith.truncf %48 : vector<8x64xf32> to vector<8x64xbf16>
    %cst_22 = arith.constant dense<0.000000e+00> : vector<8x256xf32>
    %52 = tpu.matmul %51, %2, %cst_22 {dimension_numbers = #tpu.dot_dimension_numbers<[1], [0], [0], [1], [0, 0, 1, 1], [], []>} : vector<8x64xbf16>, vector<64x256xbf16>, vector<8x256xf32> -> vector<8x256xf32>
    %53 = arith.addf %50, %52 : vector<8x256xf32>
    %54 = vector.extract_strided_slice %53 {offsets = [0, 0], sizes = [8, 128], strides = [1, 1]} : vector<8x256xf32> to vector<8x128xf32>
    %55 = arith.negf %54 : vector<8x128xf32>
    %56 = math.exp %55 : vector<8x128xf32>
    %cst_23 = arith.constant 1.000000e+00 : f32
    %57 = vector.broadcast %cst_23 : f32 to vector<8x128xf32>
    %58 = arith.addf %57, %56 : vector<8x128xf32>
    %59 = arith.divf %57, %58 : vector<8x128xf32>
    %60 = vector.extract_strided_slice %53 {offsets = [0, 128], sizes = [8, 128], strides = [1, 1]} : vector<8x256xf32> to vector<8x128xf32>
    %61 = math.tanh %60 : vector<8x128xf32>
    %62 = arith.negf %60 : vector<8x128xf32>
    %63 = math.exp %62 : vector<8x128xf32>
    %cst_24 = arith.constant 1.000000e+00 : f32
    %64 = vector.broadcast %cst_24 : f32 to vector<8x128xf32>
    %65 = arith.addf %64, %63 : vector<8x128xf32>
    %66 = arith.divf %64, %65 : vector<8x128xf32>
    %67 = arith.select %8, %61, %66 : vector<8x128xi1>, vector<8x128xf32>
    %68 = vector.extract_strided_slice %59 {offsets = [0, 0], sizes = [8, 64], strides = [1, 1]} : vector<8x128xf32> to vector<8x64xf32>
    %69 = vector.extract_strided_slice %59 {offsets = [0, 64], sizes = [8, 64], strides = [1, 1]} : vector<8x128xf32> to vector<8x64xf32>
    %70 = vector.extract_strided_slice %67 {offsets = [0, 0], sizes = [8, 64], strides = [1, 1]} : vector<8x128xf32> to vector<8x64xf32>
    %71 = vector.extract_strided_slice %67 {offsets = [0, 64], sizes = [8, 64], strides = [1, 1]} : vector<8x128xf32> to vector<8x64xf32>
    %72 = arith.mulf %69, %9 : vector<8x64xf32>
    %73 = arith.mulf %68, %70 : vector<8x64xf32>
    %74 = arith.addf %72, %73 : vector<8x64xf32>
    %75 = math.tanh %74 : vector<8x64xf32>
    %76 = arith.mulf %71, %75 : vector<8x64xf32>
    %c1_i32 = arith.constant 1 : i32
    %77 = arith.truncf %76 : vector<8x64xf32> to vector<8x64xbf16>
    %cst_25 = arith.constant dense<0.000000e+00> : vector<8x256xf32>
    %78 = tpu.matmul %77, %3, %cst_25 {dimension_numbers = #tpu.dot_dimension_numbers<[1], [0], [0], [1], [0, 0, 1, 1], [], []>} : vector<8x64xbf16>, vector<64x256xbf16>, vector<8x256xf32> -> vector<8x256xf32>
    %c8_i32_26 = arith.constant 8 : i32
    %79 = arith.muli %c1_i32, %c8_i32_26 : i32
    %80 = tpu.assume_multiple %79, 8 : i32
    %81 = arith.index_cast %80 : i32 to index
    %c0_27 = arith.constant 0 : index
    %82 = vector.load %arg11[%81, %c0_27] : memref<64x256xf32, #tpu.memory_space<vmem>>, vector<8x256xf32>
    %83 = arith.truncf %48 : vector<8x64xf32> to vector<8x64xbf16>
    %cst_28 = arith.constant dense<0.000000e+00> : vector<8x256xf32>
    %84 = tpu.matmul %83, %1, %cst_28 {dimension_numbers = #tpu.dot_dimension_numbers<[1], [0], [0], [1], [0, 0, 1, 1], [], []>} : vector<8x64xbf16>, vector<64x256xbf16>, vector<8x256xf32> -> vector<8x256xf32>
    %85 = arith.addf %82, %84 : vector<8x256xf32>
    %86 = vector.extract_strided_slice %85 {offsets = [0, 0], sizes = [8, 128], strides = [1, 1]} : vector<8x256xf32> to vector<8x128xf32>
    %87 = arith.negf %86 : vector<8x128xf32>
    %88 = math.exp %87 : vector<8x128xf32>
    %cst_29 = arith.constant 1.000000e+00 : f32
    %89 = vector.broadcast %cst_29 : f32 to vector<8x128xf32>
    %90 = arith.addf %89, %88 : vector<8x128xf32>
    %91 = arith.divf %89, %90 : vector<8x128xf32>
    %92 = vector.extract_strided_slice %85 {offsets = [0, 128], sizes = [8, 128], strides = [1, 1]} : vector<8x256xf32> to vector<8x128xf32>
    %93 = math.tanh %92 : vector<8x128xf32>
    %94 = arith.negf %92 : vector<8x128xf32>
    %95 = math.exp %94 : vector<8x128xf32>
    %cst_30 = arith.constant 1.000000e+00 : f32
    %96 = vector.broadcast %cst_30 : f32 to vector<8x128xf32>
    %97 = arith.addf %96, %95 : vector<8x128xf32>
    %98 = arith.divf %96, %97 : vector<8x128xf32>
    %99 = arith.select %8, %93, %98 : vector<8x128xi1>, vector<8x128xf32>
    %100 = vector.extract_strided_slice %91 {offsets = [0, 0], sizes = [8, 64], strides = [1, 1]} : vector<8x128xf32> to vector<8x64xf32>
    %101 = vector.extract_strided_slice %91 {offsets = [0, 64], sizes = [8, 64], strides = [1, 1]} : vector<8x128xf32> to vector<8x64xf32>
    %102 = vector.extract_strided_slice %99 {offsets = [0, 0], sizes = [8, 64], strides = [1, 1]} : vector<8x128xf32> to vector<8x64xf32>
    %103 = vector.extract_strided_slice %99 {offsets = [0, 64], sizes = [8, 64], strides = [1, 1]} : vector<8x128xf32> to vector<8x64xf32>
    %104 = arith.mulf %101, %46 : vector<8x64xf32>
    %105 = arith.mulf %100, %102 : vector<8x64xf32>
    %106 = arith.addf %104, %105 : vector<8x64xf32>
    %107 = math.tanh %106 : vector<8x64xf32>
    %108 = arith.mulf %103, %107 : vector<8x64xf32>
    %109 = vector.broadcast %5 : vector<1x256xf32> to vector<8x256xf32>
    %110 = arith.addf %78, %109 : vector<8x256xf32>
    %111 = arith.truncf %108 : vector<8x64xf32> to vector<8x64xbf16>
    %cst_31 = arith.constant dense<0.000000e+00> : vector<8x256xf32>
    %112 = tpu.matmul %111, %2, %cst_31 {dimension_numbers = #tpu.dot_dimension_numbers<[1], [0], [0], [1], [0, 0, 1, 1], [], []>} : vector<8x64xbf16>, vector<64x256xbf16>, vector<8x256xf32> -> vector<8x256xf32>
    %113 = arith.addf %110, %112 : vector<8x256xf32>
    %114 = vector.extract_strided_slice %113 {offsets = [0, 0], sizes = [8, 128], strides = [1, 1]} : vector<8x256xf32> to vector<8x128xf32>
    %115 = arith.negf %114 : vector<8x128xf32>
    %116 = math.exp %115 : vector<8x128xf32>
    %cst_32 = arith.constant 1.000000e+00 : f32
    %117 = vector.broadcast %cst_32 : f32 to vector<8x128xf32>
    %118 = arith.addf %117, %116 : vector<8x128xf32>
    %119 = arith.divf %117, %118 : vector<8x128xf32>
    %120 = vector.extract_strided_slice %113 {offsets = [0, 128], sizes = [8, 128], strides = [1, 1]} : vector<8x256xf32> to vector<8x128xf32>
    %121 = math.tanh %120 : vector<8x128xf32>
    %122 = arith.negf %120 : vector<8x128xf32>
    %123 = math.exp %122 : vector<8x128xf32>
    %cst_33 = arith.constant 1.000000e+00 : f32
    %124 = vector.broadcast %cst_33 : f32 to vector<8x128xf32>
    %125 = arith.addf %124, %123 : vector<8x128xf32>
    %126 = arith.divf %124, %125 : vector<8x128xf32>
    %127 = arith.select %8, %121, %126 : vector<8x128xi1>, vector<8x128xf32>
    %128 = vector.extract_strided_slice %119 {offsets = [0, 0], sizes = [8, 64], strides = [1, 1]} : vector<8x128xf32> to vector<8x64xf32>
    %129 = vector.extract_strided_slice %119 {offsets = [0, 64], sizes = [8, 64], strides = [1, 1]} : vector<8x128xf32> to vector<8x64xf32>
    %130 = vector.extract_strided_slice %127 {offsets = [0, 0], sizes = [8, 64], strides = [1, 1]} : vector<8x128xf32> to vector<8x64xf32>
    %131 = vector.extract_strided_slice %127 {offsets = [0, 64], sizes = [8, 64], strides = [1, 1]} : vector<8x128xf32> to vector<8x64xf32>
    %132 = arith.mulf %129, %74 : vector<8x64xf32>
    %133 = arith.mulf %128, %130 : vector<8x64xf32>
    %134 = arith.addf %132, %133 : vector<8x64xf32>
    %135 = math.tanh %134 : vector<8x64xf32>
    %136 = arith.mulf %131, %135 : vector<8x64xf32>
    %c2_i32 = arith.constant 2 : i32
    %137 = arith.truncf %136 : vector<8x64xf32> to vector<8x64xbf16>
    %cst_34 = arith.constant dense<0.000000e+00> : vector<8x256xf32>
    %138 = tpu.matmul %137, %3, %cst_34 {dimension_numbers = #tpu.dot_dimension_numbers<[1], [0], [0], [1], [0, 0, 1, 1], [], []>} : vector<8x64xbf16>, vector<64x256xbf16>, vector<8x256xf32> -> vector<8x256xf32>
    %c8_i32_35 = arith.constant 8 : i32
    %139 = arith.muli %c2_i32, %c8_i32_35 : i32
    %140 = tpu.assume_multiple %139, 8 : i32
    %141 = arith.index_cast %140 : i32 to index
    %c0_36 = arith.constant 0 : index
    %142 = vector.load %arg11[%141, %c0_36] : memref<64x256xf32, #tpu.memory_space<vmem>>, vector<8x256xf32>
    %143 = arith.truncf %108 : vector<8x64xf32> to vector<8x64xbf16>
    %cst_37 = arith.constant dense<0.000000e+00> : vector<8x256xf32>
    %144 = tpu.matmul %143, %1, %cst_37 {dimension_numbers = #tpu.dot_dimension_numbers<[1], [0], [0], [1], [0, 0, 1, 1], [], []>} : vector<8x64xbf16>, vector<64x256xbf16>, vector<8x256xf32> -> vector<8x256xf32>
    %145 = arith.addf %142, %144 : vector<8x256xf32>
    %146 = vector.extract_strided_slice %145 {offsets = [0, 0], sizes = [8, 128], strides = [1, 1]} : vector<8x256xf32> to vector<8x128xf32>
    %147 = arith.negf %146 : vector<8x128xf32>
    %148 = math.exp %147 : vector<8x128xf32>
    %cst_38 = arith.constant 1.000000e+00 : f32
    %149 = vector.broadcast %cst_38 : f32 to vector<8x128xf32>
    %150 = arith.addf %149, %148 : vector<8x128xf32>
    %151 = arith.divf %149, %150 : vector<8x128xf32>
    %152 = vector.extract_strided_slice %145 {offsets = [0, 128], sizes = [8, 128], strides = [1, 1]} : vector<8x256xf32> to vector<8x128xf32>
    %153 = math.tanh %152 : vector<8x128xf32>
    %154 = arith.negf %152 : vector<8x128xf32>
    %155 = math.exp %154 : vector<8x128xf32>
    %cst_39 = arith.constant 1.000000e+00 : f32
    %156 = vector.broadcast %cst_39 : f32 to vector<8x128xf32>
    %157 = arith.addf %156, %155 : vector<8x128xf32>
    %158 = arith.divf %156, %157 : vector<8x128xf32>
    %159 = arith.select %8, %153, %158 : vector<8x128xi1>, vector<8x128xf32>
    %160 = vector.extract_strided_slice %151 {offsets = [0, 0], sizes = [8, 64], strides = [1, 1]} : vector<8x128xf32> to vector<8x64xf32>
    %161 = vector.extract_strided_slice %151 {offsets = [0, 64], sizes = [8, 64], strides = [1, 1]} : vector<8x128xf32> to vector<8x64xf32>
    %162 = vector.extract_strided_slice %159 {offsets = [0, 0], sizes = [8, 64], strides = [1, 1]} : vector<8x128xf32> to vector<8x64xf32>
    %163 = vector.extract_strided_slice %159 {offsets = [0, 64], sizes = [8, 64], strides = [1, 1]} : vector<8x128xf32> to vector<8x64xf32>
    %164 = arith.mulf %161, %106 : vector<8x64xf32>
    %165 = arith.mulf %160, %162 : vector<8x64xf32>
    %166 = arith.addf %164, %165 : vector<8x64xf32>
    %167 = math.tanh %166 : vector<8x64xf32>
    %168 = arith.mulf %163, %167 : vector<8x64xf32>
    %169 = vector.broadcast %5 : vector<1x256xf32> to vector<8x256xf32>
    %170 = arith.addf %138, %169 : vector<8x256xf32>
    %171 = arith.truncf %168 : vector<8x64xf32> to vector<8x64xbf16>
    %cst_40 = arith.constant dense<0.000000e+00> : vector<8x256xf32>
    %172 = tpu.matmul %171, %2, %cst_40 {dimension_numbers = #tpu.dot_dimension_numbers<[1], [0], [0], [1], [0, 0, 1, 1], [], []>} : vector<8x64xbf16>, vector<64x256xbf16>, vector<8x256xf32> -> vector<8x256xf32>
    %173 = arith.addf %170, %172 : vector<8x256xf32>
    %174 = vector.extract_strided_slice %173 {offsets = [0, 0], sizes = [8, 128], strides = [1, 1]} : vector<8x256xf32> to vector<8x128xf32>
    %175 = arith.negf %174 : vector<8x128xf32>
    %176 = math.exp %175 : vector<8x128xf32>
    %cst_41 = arith.constant 1.000000e+00 : f32
    %177 = vector.broadcast %cst_41 : f32 to vector<8x128xf32>
    %178 = arith.addf %177, %176 : vector<8x128xf32>
    %179 = arith.divf %177, %178 : vector<8x128xf32>
    %180 = vector.extract_strided_slice %173 {offsets = [0, 128], sizes = [8, 128], strides = [1, 1]} : vector<8x256xf32> to vector<8x128xf32>
    %181 = math.tanh %180 : vector<8x128xf32>
    %182 = arith.negf %180 : vector<8x128xf32>
    %183 = math.exp %182 : vector<8x128xf32>
    %cst_42 = arith.constant 1.000000e+00 : f32
    %184 = vector.broadcast %cst_42 : f32 to vector<8x128xf32>
    %185 = arith.addf %184, %183 : vector<8x128xf32>
    %186 = arith.divf %184, %185 : vector<8x128xf32>
    %187 = arith.select %8, %181, %186 : vector<8x128xi1>, vector<8x128xf32>
    %188 = vector.extract_strided_slice %179 {offsets = [0, 0], sizes = [8, 64], strides = [1, 1]} : vector<8x128xf32> to vector<8x64xf32>
    %189 = vector.extract_strided_slice %179 {offsets = [0, 64], sizes = [8, 64], strides = [1, 1]} : vector<8x128xf32> to vector<8x64xf32>
    %190 = vector.extract_strided_slice %187 {offsets = [0, 0], sizes = [8, 64], strides = [1, 1]} : vector<8x128xf32> to vector<8x64xf32>
    %191 = vector.extract_strided_slice %187 {offsets = [0, 64], sizes = [8, 64], strides = [1, 1]} : vector<8x128xf32> to vector<8x64xf32>
    %192 = arith.mulf %189, %134 : vector<8x64xf32>
    %193 = arith.mulf %188, %190 : vector<8x64xf32>
    %194 = arith.addf %192, %193 : vector<8x64xf32>
    %195 = math.tanh %194 : vector<8x64xf32>
    %196 = arith.mulf %191, %195 : vector<8x64xf32>
    %c3_i32 = arith.constant 3 : i32
    %197 = arith.truncf %196 : vector<8x64xf32> to vector<8x64xbf16>
    %cst_43 = arith.constant dense<0.000000e+00> : vector<8x256xf32>
    %198 = tpu.matmul %197, %3, %cst_43 {dimension_numbers = #tpu.dot_dimension_numbers<[1], [0], [0], [1], [0, 0, 1, 1], [], []>} : vector<8x64xbf16>, vector<64x256xbf16>, vector<8x256xf32> -> vector<8x256xf32>
    %c8_i32_44 = arith.constant 8 : i32
    %199 = arith.muli %c3_i32, %c8_i32_44 : i32
    %200 = tpu.assume_multiple %199, 8 : i32
    %201 = arith.index_cast %200 : i32 to index
    %c0_45 = arith.constant 0 : index
    %202 = vector.load %arg11[%201, %c0_45] : memref<64x256xf32, #tpu.memory_space<vmem>>, vector<8x256xf32>
    %203 = arith.truncf %168 : vector<8x64xf32> to vector<8x64xbf16>
    %cst_46 = arith.constant dense<0.000000e+00> : vector<8x256xf32>
    %204 = tpu.matmul %203, %1, %cst_46 {dimension_numbers = #tpu.dot_dimension_numbers<[1], [0], [0], [1], [0, 0, 1, 1], [], []>} : vector<8x64xbf16>, vector<64x256xbf16>, vector<8x256xf32> -> vector<8x256xf32>
    %205 = arith.addf %202, %204 : vector<8x256xf32>
    %206 = vector.extract_strided_slice %205 {offsets = [0, 0], sizes = [8, 128], strides = [1, 1]} : vector<8x256xf32> to vector<8x128xf32>
    %207 = arith.negf %206 : vector<8x128xf32>
    %208 = math.exp %207 : vector<8x128xf32>
    %cst_47 = arith.constant 1.000000e+00 : f32
    %209 = vector.broadcast %cst_47 : f32 to vector<8x128xf32>
    %210 = arith.addf %209, %208 : vector<8x128xf32>
    %211 = arith.divf %209, %210 : vector<8x128xf32>
    %212 = vector.extract_strided_slice %205 {offsets = [0, 128], sizes = [8, 128], strides = [1, 1]} : vector<8x256xf32> to vector<8x128xf32>
    %213 = math.tanh %212 : vector<8x128xf32>
    %214 = arith.negf %212 : vector<8x128xf32>
    %215 = math.exp %214 : vector<8x128xf32>
    %cst_48 = arith.constant 1.000000e+00 : f32
    %216 = vector.broadcast %cst_48 : f32 to vector<8x128xf32>
    %217 = arith.addf %216, %215 : vector<8x128xf32>
    %218 = arith.divf %216, %217 : vector<8x128xf32>
    %219 = arith.select %8, %213, %218 : vector<8x128xi1>, vector<8x128xf32>
    %220 = vector.extract_strided_slice %211 {offsets = [0, 0], sizes = [8, 64], strides = [1, 1]} : vector<8x128xf32> to vector<8x64xf32>
    %221 = vector.extract_strided_slice %211 {offsets = [0, 64], sizes = [8, 64], strides = [1, 1]} : vector<8x128xf32> to vector<8x64xf32>
    %222 = vector.extract_strided_slice %219 {offsets = [0, 0], sizes = [8, 64], strides = [1, 1]} : vector<8x128xf32> to vector<8x64xf32>
    %223 = vector.extract_strided_slice %219 {offsets = [0, 64], sizes = [8, 64], strides = [1, 1]} : vector<8x128xf32> to vector<8x64xf32>
    %224 = arith.mulf %221, %166 : vector<8x64xf32>
    %225 = arith.mulf %220, %222 : vector<8x64xf32>
    %226 = arith.addf %224, %225 : vector<8x64xf32>
    %227 = math.tanh %226 : vector<8x64xf32>
    %228 = arith.mulf %223, %227 : vector<8x64xf32>
    %229 = vector.broadcast %5 : vector<1x256xf32> to vector<8x256xf32>
    %230 = arith.addf %198, %229 : vector<8x256xf32>
    %231 = arith.truncf %228 : vector<8x64xf32> to vector<8x64xbf16>
    %cst_49 = arith.constant dense<0.000000e+00> : vector<8x256xf32>
    %232 = tpu.matmul %231, %2, %cst_49 {dimension_numbers = #tpu.dot_dimension_numbers<[1], [0], [0], [1], [0, 0, 1, 1], [], []>} : vector<8x64xbf16>, vector<64x256xbf16>, vector<8x256xf32> -> vector<8x256xf32>
    %233 = arith.addf %230, %232 : vector<8x256xf32>
    %234 = vector.extract_strided_slice %233 {offsets = [0, 0], sizes = [8, 128], strides = [1, 1]} : vector<8x256xf32> to vector<8x128xf32>
    %235 = arith.negf %234 : vector<8x128xf32>
    %236 = math.exp %235 : vector<8x128xf32>
    %cst_50 = arith.constant 1.000000e+00 : f32
    %237 = vector.broadcast %cst_50 : f32 to vector<8x128xf32>
    %238 = arith.addf %237, %236 : vector<8x128xf32>
    %239 = arith.divf %237, %238 : vector<8x128xf32>
    %240 = vector.extract_strided_slice %233 {offsets = [0, 128], sizes = [8, 128], strides = [1, 1]} : vector<8x256xf32> to vector<8x128xf32>
    %241 = math.tanh %240 : vector<8x128xf32>
    %242 = arith.negf %240 : vector<8x128xf32>
    %243 = math.exp %242 : vector<8x128xf32>
    %cst_51 = arith.constant 1.000000e+00 : f32
    %244 = vector.broadcast %cst_51 : f32 to vector<8x128xf32>
    %245 = arith.addf %244, %243 : vector<8x128xf32>
    %246 = arith.divf %244, %245 : vector<8x128xf32>
    %247 = arith.select %8, %241, %246 : vector<8x128xi1>, vector<8x128xf32>
    %248 = vector.extract_strided_slice %239 {offsets = [0, 0], sizes = [8, 64], strides = [1, 1]} : vector<8x128xf32> to vector<8x64xf32>
    %249 = vector.extract_strided_slice %239 {offsets = [0, 64], sizes = [8, 64], strides = [1, 1]} : vector<8x128xf32> to vector<8x64xf32>
    %250 = vector.extract_strided_slice %247 {offsets = [0, 0], sizes = [8, 64], strides = [1, 1]} : vector<8x128xf32> to vector<8x64xf32>
    %251 = vector.extract_strided_slice %247 {offsets = [0, 64], sizes = [8, 64], strides = [1, 1]} : vector<8x128xf32> to vector<8x64xf32>
    %252 = arith.mulf %249, %194 : vector<8x64xf32>
    %253 = arith.mulf %248, %250 : vector<8x64xf32>
    %254 = arith.addf %252, %253 : vector<8x64xf32>
    %255 = math.tanh %254 : vector<8x64xf32>
    %256 = arith.mulf %251, %255 : vector<8x64xf32>
    %c4_i32 = arith.constant 4 : i32
    %257 = arith.truncf %256 : vector<8x64xf32> to vector<8x64xbf16>
    %cst_52 = arith.constant dense<0.000000e+00> : vector<8x256xf32>
    %258 = tpu.matmul %257, %3, %cst_52 {dimension_numbers = #tpu.dot_dimension_numbers<[1], [0], [0], [1], [0, 0, 1, 1], [], []>} : vector<8x64xbf16>, vector<64x256xbf16>, vector<8x256xf32> -> vector<8x256xf32>
    %c8_i32_53 = arith.constant 8 : i32
    %259 = arith.muli %c4_i32, %c8_i32_53 : i32
    %260 = tpu.assume_multiple %259, 8 : i32
    %261 = arith.index_cast %260 : i32 to index
    %c0_54 = arith.constant 0 : index
    %262 = vector.load %arg11[%261, %c0_54] : memref<64x256xf32, #tpu.memory_space<vmem>>, vector<8x256xf32>
    %263 = arith.truncf %228 : vector<8x64xf32> to vector<8x64xbf16>
    %cst_55 = arith.constant dense<0.000000e+00> : vector<8x256xf32>
    %264 = tpu.matmul %263, %1, %cst_55 {dimension_numbers = #tpu.dot_dimension_numbers<[1], [0], [0], [1], [0, 0, 1, 1], [], []>} : vector<8x64xbf16>, vector<64x256xbf16>, vector<8x256xf32> -> vector<8x256xf32>
    %265 = arith.addf %262, %264 : vector<8x256xf32>
    %266 = vector.extract_strided_slice %265 {offsets = [0, 0], sizes = [8, 128], strides = [1, 1]} : vector<8x256xf32> to vector<8x128xf32>
    %267 = arith.negf %266 : vector<8x128xf32>
    %268 = math.exp %267 : vector<8x128xf32>
    %cst_56 = arith.constant 1.000000e+00 : f32
    %269 = vector.broadcast %cst_56 : f32 to vector<8x128xf32>
    %270 = arith.addf %269, %268 : vector<8x128xf32>
    %271 = arith.divf %269, %270 : vector<8x128xf32>
    %272 = vector.extract_strided_slice %265 {offsets = [0, 128], sizes = [8, 128], strides = [1, 1]} : vector<8x256xf32> to vector<8x128xf32>
    %273 = math.tanh %272 : vector<8x128xf32>
    %274 = arith.negf %272 : vector<8x128xf32>
    %275 = math.exp %274 : vector<8x128xf32>
    %cst_57 = arith.constant 1.000000e+00 : f32
    %276 = vector.broadcast %cst_57 : f32 to vector<8x128xf32>
    %277 = arith.addf %276, %275 : vector<8x128xf32>
    %278 = arith.divf %276, %277 : vector<8x128xf32>
    %279 = arith.select %8, %273, %278 : vector<8x128xi1>, vector<8x128xf32>
    %280 = vector.extract_strided_slice %271 {offsets = [0, 0], sizes = [8, 64], strides = [1, 1]} : vector<8x128xf32> to vector<8x64xf32>
    %281 = vector.extract_strided_slice %271 {offsets = [0, 64], sizes = [8, 64], strides = [1, 1]} : vector<8x128xf32> to vector<8x64xf32>
    %282 = vector.extract_strided_slice %279 {offsets = [0, 0], sizes = [8, 64], strides = [1, 1]} : vector<8x128xf32> to vector<8x64xf32>
    %283 = vector.extract_strided_slice %279 {offsets = [0, 64], sizes = [8, 64], strides = [1, 1]} : vector<8x128xf32> to vector<8x64xf32>
    %284 = arith.mulf %281, %226 : vector<8x64xf32>
    %285 = arith.mulf %280, %282 : vector<8x64xf32>
    %286 = arith.addf %284, %285 : vector<8x64xf32>
    %287 = math.tanh %286 : vector<8x64xf32>
    %288 = arith.mulf %283, %287 : vector<8x64xf32>
    %289 = vector.broadcast %5 : vector<1x256xf32> to vector<8x256xf32>
    %290 = arith.addf %258, %289 : vector<8x256xf32>
    %291 = arith.truncf %288 : vector<8x64xf32> to vector<8x64xbf16>
    %cst_58 = arith.constant dense<0.000000e+00> : vector<8x256xf32>
    %292 = tpu.matmul %291, %2, %cst_58 {dimension_numbers = #tpu.dot_dimension_numbers<[1], [0], [0], [1], [0, 0, 1, 1], [], []>} : vector<8x64xbf16>, vector<64x256xbf16>, vector<8x256xf32> -> vector<8x256xf32>
    %293 = arith.addf %290, %292 : vector<8x256xf32>
    %294 = vector.extract_strided_slice %293 {offsets = [0, 0], sizes = [8, 128], strides = [1, 1]} : vector<8x256xf32> to vector<8x128xf32>
    %295 = arith.negf %294 : vector<8x128xf32>
    %296 = math.exp %295 : vector<8x128xf32>
    %cst_59 = arith.constant 1.000000e+00 : f32
    %297 = vector.broadcast %cst_59 : f32 to vector<8x128xf32>
    %298 = arith.addf %297, %296 : vector<8x128xf32>
    %299 = arith.divf %297, %298 : vector<8x128xf32>
    %300 = vector.extract_strided_slice %293 {offsets = [0, 128], sizes = [8, 128], strides = [1, 1]} : vector<8x256xf32> to vector<8x128xf32>
    %301 = math.tanh %300 : vector<8x128xf32>
    %302 = arith.negf %300 : vector<8x128xf32>
    %303 = math.exp %302 : vector<8x128xf32>
    %cst_60 = arith.constant 1.000000e+00 : f32
    %304 = vector.broadcast %cst_60 : f32 to vector<8x128xf32>
    %305 = arith.addf %304, %303 : vector<8x128xf32>
    %306 = arith.divf %304, %305 : vector<8x128xf32>
    %307 = arith.select %8, %301, %306 : vector<8x128xi1>, vector<8x128xf32>
    %308 = vector.extract_strided_slice %299 {offsets = [0, 0], sizes = [8, 64], strides = [1, 1]} : vector<8x128xf32> to vector<8x64xf32>
    %309 = vector.extract_strided_slice %299 {offsets = [0, 64], sizes = [8, 64], strides = [1, 1]} : vector<8x128xf32> to vector<8x64xf32>
    %310 = vector.extract_strided_slice %307 {offsets = [0, 0], sizes = [8, 64], strides = [1, 1]} : vector<8x128xf32> to vector<8x64xf32>
    %311 = vector.extract_strided_slice %307 {offsets = [0, 64], sizes = [8, 64], strides = [1, 1]} : vector<8x128xf32> to vector<8x64xf32>
    %312 = arith.mulf %309, %254 : vector<8x64xf32>
    %313 = arith.mulf %308, %310 : vector<8x64xf32>
    %314 = arith.addf %312, %313 : vector<8x64xf32>
    %315 = math.tanh %314 : vector<8x64xf32>
    %316 = arith.mulf %311, %315 : vector<8x64xf32>
    %c5_i32 = arith.constant 5 : i32
    %317 = arith.truncf %316 : vector<8x64xf32> to vector<8x64xbf16>
    %cst_61 = arith.constant dense<0.000000e+00> : vector<8x256xf32>
    %318 = tpu.matmul %317, %3, %cst_61 {dimension_numbers = #tpu.dot_dimension_numbers<[1], [0], [0], [1], [0, 0, 1, 1], [], []>} : vector<8x64xbf16>, vector<64x256xbf16>, vector<8x256xf32> -> vector<8x256xf32>
    %c8_i32_62 = arith.constant 8 : i32
    %319 = arith.muli %c5_i32, %c8_i32_62 : i32
    %320 = tpu.assume_multiple %319, 8 : i32
    %321 = arith.index_cast %320 : i32 to index
    %c0_63 = arith.constant 0 : index
    %322 = vector.load %arg11[%321, %c0_63] : memref<64x256xf32, #tpu.memory_space<vmem>>, vector<8x256xf32>
    %323 = arith.truncf %288 : vector<8x64xf32> to vector<8x64xbf16>
    %cst_64 = arith.constant dense<0.000000e+00> : vector<8x256xf32>
    %324 = tpu.matmul %323, %1, %cst_64 {dimension_numbers = #tpu.dot_dimension_numbers<[1], [0], [0], [1], [0, 0, 1, 1], [], []>} : vector<8x64xbf16>, vector<64x256xbf16>, vector<8x256xf32> -> vector<8x256xf32>
    %325 = arith.addf %322, %324 : vector<8x256xf32>
    %326 = vector.extract_strided_slice %325 {offsets = [0, 0], sizes = [8, 128], strides = [1, 1]} : vector<8x256xf32> to vector<8x128xf32>
    %327 = arith.negf %326 : vector<8x128xf32>
    %328 = math.exp %327 : vector<8x128xf32>
    %cst_65 = arith.constant 1.000000e+00 : f32
    %329 = vector.broadcast %cst_65 : f32 to vector<8x128xf32>
    %330 = arith.addf %329, %328 : vector<8x128xf32>
    %331 = arith.divf %329, %330 : vector<8x128xf32>
    %332 = vector.extract_strided_slice %325 {offsets = [0, 128], sizes = [8, 128], strides = [1, 1]} : vector<8x256xf32> to vector<8x128xf32>
    %333 = math.tanh %332 : vector<8x128xf32>
    %334 = arith.negf %332 : vector<8x128xf32>
    %335 = math.exp %334 : vector<8x128xf32>
    %cst_66 = arith.constant 1.000000e+00 : f32
    %336 = vector.broadcast %cst_66 : f32 to vector<8x128xf32>
    %337 = arith.addf %336, %335 : vector<8x128xf32>
    %338 = arith.divf %336, %337 : vector<8x128xf32>
    %339 = arith.select %8, %333, %338 : vector<8x128xi1>, vector<8x128xf32>
    %340 = vector.extract_strided_slice %331 {offsets = [0, 0], sizes = [8, 64], strides = [1, 1]} : vector<8x128xf32> to vector<8x64xf32>
    %341 = vector.extract_strided_slice %331 {offsets = [0, 64], sizes = [8, 64], strides = [1, 1]} : vector<8x128xf32> to vector<8x64xf32>
    %342 = vector.extract_strided_slice %339 {offsets = [0, 0], sizes = [8, 64], strides = [1, 1]} : vector<8x128xf32> to vector<8x64xf32>
    %343 = vector.extract_strided_slice %339 {offsets = [0, 64], sizes = [8, 64], strides = [1, 1]} : vector<8x128xf32> to vector<8x64xf32>
    %344 = arith.mulf %341, %286 : vector<8x64xf32>
    %345 = arith.mulf %340, %342 : vector<8x64xf32>
    %346 = arith.addf %344, %345 : vector<8x64xf32>
    %347 = math.tanh %346 : vector<8x64xf32>
    %348 = arith.mulf %343, %347 : vector<8x64xf32>
    %349 = vector.broadcast %5 : vector<1x256xf32> to vector<8x256xf32>
    %350 = arith.addf %318, %349 : vector<8x256xf32>
    %351 = arith.truncf %348 : vector<8x64xf32> to vector<8x64xbf16>
    %cst_67 = arith.constant dense<0.000000e+00> : vector<8x256xf32>
    %352 = tpu.matmul %351, %2, %cst_67 {dimension_numbers = #tpu.dot_dimension_numbers<[1], [0], [0], [1], [0, 0, 1, 1], [], []>} : vector<8x64xbf16>, vector<64x256xbf16>, vector<8x256xf32> -> vector<8x256xf32>
    %353 = arith.addf %350, %352 : vector<8x256xf32>
    %354 = vector.extract_strided_slice %353 {offsets = [0, 0], sizes = [8, 128], strides = [1, 1]} : vector<8x256xf32> to vector<8x128xf32>
    %355 = arith.negf %354 : vector<8x128xf32>
    %356 = math.exp %355 : vector<8x128xf32>
    %cst_68 = arith.constant 1.000000e+00 : f32
    %357 = vector.broadcast %cst_68 : f32 to vector<8x128xf32>
    %358 = arith.addf %357, %356 : vector<8x128xf32>
    %359 = arith.divf %357, %358 : vector<8x128xf32>
    %360 = vector.extract_strided_slice %353 {offsets = [0, 128], sizes = [8, 128], strides = [1, 1]} : vector<8x256xf32> to vector<8x128xf32>
    %361 = math.tanh %360 : vector<8x128xf32>
    %362 = arith.negf %360 : vector<8x128xf32>
    %363 = math.exp %362 : vector<8x128xf32>
    %cst_69 = arith.constant 1.000000e+00 : f32
    %364 = vector.broadcast %cst_69 : f32 to vector<8x128xf32>
    %365 = arith.addf %364, %363 : vector<8x128xf32>
    %366 = arith.divf %364, %365 : vector<8x128xf32>
    %367 = arith.select %8, %361, %366 : vector<8x128xi1>, vector<8x128xf32>
    %368 = vector.extract_strided_slice %359 {offsets = [0, 0], sizes = [8, 64], strides = [1, 1]} : vector<8x128xf32> to vector<8x64xf32>
    %369 = vector.extract_strided_slice %359 {offsets = [0, 64], sizes = [8, 64], strides = [1, 1]} : vector<8x128xf32> to vector<8x64xf32>
    %370 = vector.extract_strided_slice %367 {offsets = [0, 0], sizes = [8, 64], strides = [1, 1]} : vector<8x128xf32> to vector<8x64xf32>
    %371 = vector.extract_strided_slice %367 {offsets = [0, 64], sizes = [8, 64], strides = [1, 1]} : vector<8x128xf32> to vector<8x64xf32>
    %372 = arith.mulf %369, %314 : vector<8x64xf32>
    %373 = arith.mulf %368, %370 : vector<8x64xf32>
    %374 = arith.addf %372, %373 : vector<8x64xf32>
    %375 = math.tanh %374 : vector<8x64xf32>
    %376 = arith.mulf %371, %375 : vector<8x64xf32>
    %c6_i32 = arith.constant 6 : i32
    %377 = arith.truncf %376 : vector<8x64xf32> to vector<8x64xbf16>
    %cst_70 = arith.constant dense<0.000000e+00> : vector<8x256xf32>
    %378 = tpu.matmul %377, %3, %cst_70 {dimension_numbers = #tpu.dot_dimension_numbers<[1], [0], [0], [1], [0, 0, 1, 1], [], []>} : vector<8x64xbf16>, vector<64x256xbf16>, vector<8x256xf32> -> vector<8x256xf32>
    %c8_i32_71 = arith.constant 8 : i32
    %379 = arith.muli %c6_i32, %c8_i32_71 : i32
    %380 = tpu.assume_multiple %379, 8 : i32
    %381 = arith.index_cast %380 : i32 to index
    %c0_72 = arith.constant 0 : index
    %382 = vector.load %arg11[%381, %c0_72] : memref<64x256xf32, #tpu.memory_space<vmem>>, vector<8x256xf32>
    %383 = arith.truncf %348 : vector<8x64xf32> to vector<8x64xbf16>
    %cst_73 = arith.constant dense<0.000000e+00> : vector<8x256xf32>
    %384 = tpu.matmul %383, %1, %cst_73 {dimension_numbers = #tpu.dot_dimension_numbers<[1], [0], [0], [1], [0, 0, 1, 1], [], []>} : vector<8x64xbf16>, vector<64x256xbf16>, vector<8x256xf32> -> vector<8x256xf32>
    %385 = arith.addf %382, %384 : vector<8x256xf32>
    %386 = vector.extract_strided_slice %385 {offsets = [0, 0], sizes = [8, 128], strides = [1, 1]} : vector<8x256xf32> to vector<8x128xf32>
    %387 = arith.negf %386 : vector<8x128xf32>
    %388 = math.exp %387 : vector<8x128xf32>
    %cst_74 = arith.constant 1.000000e+00 : f32
    %389 = vector.broadcast %cst_74 : f32 to vector<8x128xf32>
    %390 = arith.addf %389, %388 : vector<8x128xf32>
    %391 = arith.divf %389, %390 : vector<8x128xf32>
    %392 = vector.extract_strided_slice %385 {offsets = [0, 128], sizes = [8, 128], strides = [1, 1]} : vector<8x256xf32> to vector<8x128xf32>
    %393 = math.tanh %392 : vector<8x128xf32>
    %394 = arith.negf %392 : vector<8x128xf32>
    %395 = math.exp %394 : vector<8x128xf32>
    %cst_75 = arith.constant 1.000000e+00 : f32
    %396 = vector.broadcast %cst_75 : f32 to vector<8x128xf32>
    %397 = arith.addf %396, %395 : vector<8x128xf32>
    %398 = arith.divf %396, %397 : vector<8x128xf32>
    %399 = arith.select %8, %393, %398 : vector<8x128xi1>, vector<8x128xf32>
    %400 = vector.extract_strided_slice %391 {offsets = [0, 0], sizes = [8, 64], strides = [1, 1]} : vector<8x128xf32> to vector<8x64xf32>
    %401 = vector.extract_strided_slice %391 {offsets = [0, 64], sizes = [8, 64], strides = [1, 1]} : vector<8x128xf32> to vector<8x64xf32>
    %402 = vector.extract_strided_slice %399 {offsets = [0, 0], sizes = [8, 64], strides = [1, 1]} : vector<8x128xf32> to vector<8x64xf32>
    %403 = vector.extract_strided_slice %399 {offsets = [0, 64], sizes = [8, 64], strides = [1, 1]} : vector<8x128xf32> to vector<8x64xf32>
    %404 = arith.mulf %401, %346 : vector<8x64xf32>
    %405 = arith.mulf %400, %402 : vector<8x64xf32>
    %406 = arith.addf %404, %405 : vector<8x64xf32>
    %407 = math.tanh %406 : vector<8x64xf32>
    %408 = arith.mulf %403, %407 : vector<8x64xf32>
    %409 = vector.broadcast %5 : vector<1x256xf32> to vector<8x256xf32>
    %410 = arith.addf %378, %409 : vector<8x256xf32>
    %411 = arith.truncf %408 : vector<8x64xf32> to vector<8x64xbf16>
    %cst_76 = arith.constant dense<0.000000e+00> : vector<8x256xf32>
    %412 = tpu.matmul %411, %2, %cst_76 {dimension_numbers = #tpu.dot_dimension_numbers<[1], [0], [0], [1], [0, 0, 1, 1], [], []>} : vector<8x64xbf16>, vector<64x256xbf16>, vector<8x256xf32> -> vector<8x256xf32>
    %413 = arith.addf %410, %412 : vector<8x256xf32>
    %414 = vector.extract_strided_slice %413 {offsets = [0, 0], sizes = [8, 128], strides = [1, 1]} : vector<8x256xf32> to vector<8x128xf32>
    %415 = arith.negf %414 : vector<8x128xf32>
    %416 = math.exp %415 : vector<8x128xf32>
    %cst_77 = arith.constant 1.000000e+00 : f32
    %417 = vector.broadcast %cst_77 : f32 to vector<8x128xf32>
    %418 = arith.addf %417, %416 : vector<8x128xf32>
    %419 = arith.divf %417, %418 : vector<8x128xf32>
    %420 = vector.extract_strided_slice %413 {offsets = [0, 128], sizes = [8, 128], strides = [1, 1]} : vector<8x256xf32> to vector<8x128xf32>
    %421 = math.tanh %420 : vector<8x128xf32>
    %422 = arith.negf %420 : vector<8x128xf32>
    %423 = math.exp %422 : vector<8x128xf32>
    %cst_78 = arith.constant 1.000000e+00 : f32
    %424 = vector.broadcast %cst_78 : f32 to vector<8x128xf32>
    %425 = arith.addf %424, %423 : vector<8x128xf32>
    %426 = arith.divf %424, %425 : vector<8x128xf32>
    %427 = arith.select %8, %421, %426 : vector<8x128xi1>, vector<8x128xf32>
    %428 = vector.extract_strided_slice %419 {offsets = [0, 0], sizes = [8, 64], strides = [1, 1]} : vector<8x128xf32> to vector<8x64xf32>
    %429 = vector.extract_strided_slice %419 {offsets = [0, 64], sizes = [8, 64], strides = [1, 1]} : vector<8x128xf32> to vector<8x64xf32>
    %430 = vector.extract_strided_slice %427 {offsets = [0, 0], sizes = [8, 64], strides = [1, 1]} : vector<8x128xf32> to vector<8x64xf32>
    %431 = vector.extract_strided_slice %427 {offsets = [0, 64], sizes = [8, 64], strides = [1, 1]} : vector<8x128xf32> to vector<8x64xf32>
    %432 = arith.mulf %429, %374 : vector<8x64xf32>
    %433 = arith.mulf %428, %430 : vector<8x64xf32>
    %434 = arith.addf %432, %433 : vector<8x64xf32>
    %435 = math.tanh %434 : vector<8x64xf32>
    %436 = arith.mulf %431, %435 : vector<8x64xf32>
    %c7_i32 = arith.constant 7 : i32
    %437 = arith.truncf %436 : vector<8x64xf32> to vector<8x64xbf16>
    %cst_79 = arith.constant dense<0.000000e+00> : vector<8x256xf32>
    %438 = tpu.matmul %437, %3, %cst_79 {dimension_numbers = #tpu.dot_dimension_numbers<[1], [0], [0], [1], [0, 0, 1, 1], [], []>} : vector<8x64xbf16>, vector<64x256xbf16>, vector<8x256xf32> -> vector<8x256xf32>
    %c8_i32_80 = arith.constant 8 : i32
    %439 = arith.muli %c7_i32, %c8_i32_80 : i32
    %440 = tpu.assume_multiple %439, 8 : i32
    %441 = arith.index_cast %440 : i32 to index
    %c0_81 = arith.constant 0 : index
    %442 = vector.load %arg11[%441, %c0_81] : memref<64x256xf32, #tpu.memory_space<vmem>>, vector<8x256xf32>
    %443 = arith.truncf %408 : vector<8x64xf32> to vector<8x64xbf16>
    %cst_82 = arith.constant dense<0.000000e+00> : vector<8x256xf32>
    %444 = tpu.matmul %443, %1, %cst_82 {dimension_numbers = #tpu.dot_dimension_numbers<[1], [0], [0], [1], [0, 0, 1, 1], [], []>} : vector<8x64xbf16>, vector<64x256xbf16>, vector<8x256xf32> -> vector<8x256xf32>
    %445 = arith.addf %442, %444 : vector<8x256xf32>
    %446 = vector.extract_strided_slice %445 {offsets = [0, 0], sizes = [8, 128], strides = [1, 1]} : vector<8x256xf32> to vector<8x128xf32>
    %447 = arith.negf %446 : vector<8x128xf32>
    %448 = math.exp %447 : vector<8x128xf32>
    %cst_83 = arith.constant 1.000000e+00 : f32
    %449 = vector.broadcast %cst_83 : f32 to vector<8x128xf32>
    %450 = arith.addf %449, %448 : vector<8x128xf32>
    %451 = arith.divf %449, %450 : vector<8x128xf32>
    %452 = vector.extract_strided_slice %445 {offsets = [0, 128], sizes = [8, 128], strides = [1, 1]} : vector<8x256xf32> to vector<8x128xf32>
    %453 = math.tanh %452 : vector<8x128xf32>
    %454 = arith.negf %452 : vector<8x128xf32>
    %455 = math.exp %454 : vector<8x128xf32>
    %cst_84 = arith.constant 1.000000e+00 : f32
    %456 = vector.broadcast %cst_84 : f32 to vector<8x128xf32>
    %457 = arith.addf %456, %455 : vector<8x128xf32>
    %458 = arith.divf %456, %457 : vector<8x128xf32>
    %459 = arith.select %8, %453, %458 : vector<8x128xi1>, vector<8x128xf32>
    %460 = vector.extract_strided_slice %451 {offsets = [0, 0], sizes = [8, 64], strides = [1, 1]} : vector<8x128xf32> to vector<8x64xf32>
    %461 = vector.extract_strided_slice %451 {offsets = [0, 64], sizes = [8, 64], strides = [1, 1]} : vector<8x128xf32> to vector<8x64xf32>
    %462 = vector.extract_strided_slice %459 {offsets = [0, 0], sizes = [8, 64], strides = [1, 1]} : vector<8x128xf32> to vector<8x64xf32>
    %463 = vector.extract_strided_slice %459 {offsets = [0, 64], sizes = [8, 64], strides = [1, 1]} : vector<8x128xf32> to vector<8x64xf32>
    %464 = arith.mulf %461, %406 : vector<8x64xf32>
    %465 = arith.mulf %460, %462 : vector<8x64xf32>
    %466 = arith.addf %464, %465 : vector<8x64xf32>
    %467 = math.tanh %466 : vector<8x64xf32>
    %468 = arith.mulf %463, %467 : vector<8x64xf32>
    %469 = vector.broadcast %5 : vector<1x256xf32> to vector<8x256xf32>
    %470 = arith.addf %438, %469 : vector<8x256xf32>
    %471 = arith.truncf %468 : vector<8x64xf32> to vector<8x64xbf16>
    %cst_85 = arith.constant dense<0.000000e+00> : vector<8x256xf32>
    %472 = tpu.matmul %471, %2, %cst_85 {dimension_numbers = #tpu.dot_dimension_numbers<[1], [0], [0], [1], [0, 0, 1, 1], [], []>} : vector<8x64xbf16>, vector<64x256xbf16>, vector<8x256xf32> -> vector<8x256xf32>
    %473 = arith.addf %470, %472 : vector<8x256xf32>
    %474 = vector.extract_strided_slice %473 {offsets = [0, 0], sizes = [8, 128], strides = [1, 1]} : vector<8x256xf32> to vector<8x128xf32>
    %475 = arith.negf %474 : vector<8x128xf32>
    %476 = math.exp %475 : vector<8x128xf32>
    %cst_86 = arith.constant 1.000000e+00 : f32
    %477 = vector.broadcast %cst_86 : f32 to vector<8x128xf32>
    %478 = arith.addf %477, %476 : vector<8x128xf32>
    %479 = arith.divf %477, %478 : vector<8x128xf32>
    %480 = vector.extract_strided_slice %473 {offsets = [0, 128], sizes = [8, 128], strides = [1, 1]} : vector<8x256xf32> to vector<8x128xf32>
    %481 = math.tanh %480 : vector<8x128xf32>
    %482 = arith.negf %480 : vector<8x128xf32>
    %483 = math.exp %482 : vector<8x128xf32>
    %cst_87 = arith.constant 1.000000e+00 : f32
    %484 = vector.broadcast %cst_87 : f32 to vector<8x128xf32>
    %485 = arith.addf %484, %483 : vector<8x128xf32>
    %486 = arith.divf %484, %485 : vector<8x128xf32>
    %487 = arith.select %8, %481, %486 : vector<8x128xi1>, vector<8x128xf32>
    %488 = vector.extract_strided_slice %479 {offsets = [0, 0], sizes = [8, 64], strides = [1, 1]} : vector<8x128xf32> to vector<8x64xf32>
    %489 = vector.extract_strided_slice %479 {offsets = [0, 64], sizes = [8, 64], strides = [1, 1]} : vector<8x128xf32> to vector<8x64xf32>
    %490 = vector.extract_strided_slice %487 {offsets = [0, 0], sizes = [8, 64], strides = [1, 1]} : vector<8x128xf32> to vector<8x64xf32>
    %491 = vector.extract_strided_slice %487 {offsets = [0, 64], sizes = [8, 64], strides = [1, 1]} : vector<8x128xf32> to vector<8x64xf32>
    %492 = arith.mulf %489, %434 : vector<8x64xf32>
    %493 = arith.mulf %488, %490 : vector<8x64xf32>
    %494 = arith.addf %492, %493 : vector<8x64xf32>
    %495 = math.tanh %494 : vector<8x64xf32>
    %496 = arith.mulf %491, %495 : vector<8x64xf32>
    %c8_i32_88 = arith.constant 8 : i32
    %c0_89 = arith.constant 0 : index
    %c0_90 = arith.constant 0 : index
    %497 = vector.load %arg8[%c0_89, %c0_90] : memref<1x64xf32, #tpu.memory_space<vmem>>, vector<1x64xf32>
    %498 = vector.broadcast %497 : vector<1x64xf32> to vector<8x64xf32>
    %499 = arith.mulf %496, %498 : vector<8x64xf32>
    %cst_91 = arith.constant dense<0.000000e+00> : vector<8xf32>
    %500 = vector.multi_reduction <add>, %499, %cst_91 [1] : vector<8x64xf32> to vector<8xf32>
    %501 = vector.shape_cast %500 : vector<8xf32> to vector<8x1xf32>
    %c0_92 = arith.constant 0 : index
    %c0_93 = arith.constant 0 : index
    %502 = vector.load %arg9[%c0_92, %c0_93] : memref<1x1xf32, #tpu.memory_space<vmem>>, vector<1x1xf32>
    %503 = vector.broadcast %502 : vector<1x1xf32> to vector<8x1xf32>
    %504 = arith.addf %501, %503 : vector<8x1xf32>
    %505 = arith.negf %504 : vector<8x1xf32>
    %506 = math.exp %505 : vector<8x1xf32>
    %cst_94 = arith.constant 1.000000e+00 : f32
    %507 = vector.broadcast %cst_94 : f32 to vector<8x1xf32>
    %508 = arith.addf %507, %506 : vector<8x1xf32>
    %509 = arith.divf %507, %508 : vector<8x1xf32>
    %c0_95 = arith.constant 0 : index
    %c0_96 = arith.constant 0 : index
    %510 = vector.load %arg10[%c0_95, %c0_96] : memref<8x1xf32, #tpu.memory_space<vmem>>, vector<8x1xf32>
    tpu.vector_store %arg10[%c0_95, %c0_96], %509 {strides = array<i32>} : memref<8x1xf32, #tpu.memory_space<vmem>>, vector<8x1xf32>,
    return
  }
  func.func @transform_0(%arg0: i32) -> (i32, i32, i32) {
    %c0_i32 = arith.constant 0 : i32
    %c0_i32_0 = arith.constant 0 : i32
    %c0_i32_1 = arith.constant 0 : i32
    return %c0_i32, %arg0, %c0_i32_0 : i32, i32, i32
  }
  func.func @transform_1(%arg0: i32) -> (i32, i32) {
    %c0_i32 = arith.constant 0 : i32
    %c0_i32_0 = arith.constant 0 : i32
    %c0_i32_1 = arith.constant 0 : i32
    return %c0_i32, %c0_i32_0 : i32, i32
  }
  func.func @transform_2(%arg0: i32) -> (i32, i32) {
    %c0_i32 = arith.constant 0 : i32
    %c0_i32_0 = arith.constant 0 : i32
    %c0_i32_1 = arith.constant 0 : i32
    return %c0_i32, %c0_i32_0 : i32, i32
  }
  func.func @transform_3(%arg0: i32) -> (i32, i32) {
    %c0_i32 = arith.constant 0 : i32
    %c0_i32_0 = arith.constant 0 : i32
    %c0_i32_1 = arith.constant 0 : i32
    return %c0_i32, %c0_i32_0 : i32, i32
  }
  func.func @transform_4(%arg0: i32) -> (i32, i32) {
    %c0_i32 = arith.constant 0 : i32
    %c0_i32_0 = arith.constant 0 : i32
    %c0_i32_1 = arith.constant 0 : i32
    return %c0_i32, %c0_i32_0 : i32, i32
  }
  func.func @transform_5(%arg0: i32) -> (i32, i32) {
    %c0_i32 = arith.constant 0 : i32
    %c0_i32_0 = arith.constant 0 : i32
    %c0_i32_1 = arith.constant 0 : i32
    return %c0_i32, %c0_i32_0 : i32, i32
  }
  func.func @transform_6(%arg0: i32) -> (i32, i32) {
    %c0_i32 = arith.constant 0 : i32
    %c0_i32_0 = arith.constant 0 : i32
    %c0_i32_1 = arith.constant 0 : i32
    return %c0_i32, %c0_i32_0 : i32, i32
  }
  func.func @transform_7(%arg0: i32) -> (i32, i32) {
    %c0_i32 = arith.constant 0 : i32
    %c0_i32_0 = arith.constant 0 : i32
    %c0_i32_1 = arith.constant 0 : i32
    return %c0_i32, %c0_i32_0 : i32, i32
  }
  func.func @transform_8(%arg0: i32) -> (i32, i32) {
    %c0_i32 = arith.constant 0 : i32
    %c0_i32_0 = arith.constant 0 : i32
    %c0_i32_1 = arith.constant 0 : i32
    return %c0_i32, %c0_i32_0 : i32, i32
  }
  func.func @transform_9(%arg0: i32) -> (i32, i32) {
    %c0_i32 = arith.constant 0 : i32
    %c0_i32_0 = arith.constant 0 : i32
    return %arg0, %c0_i32 : i32, i32
  }
}

</mosaic_0001>

<bundles_post_ra>
// kernel: fight_lstm_forward.1
= control target key start
LH: loop header
LB: loop body
LE: loop exit
PB: predicated region body
PF: predicated region fallthrough
CT: control target
= control target key end

     0   :  { %v2307_v1 = vmov 0   ;;  %vm99_vm0 = vcmask 130048   ;;  %v63_v20 = vlaneseq  ;;  %vm246_vm2 = vcmask 523264   ;;  %s3104_s1 = inlined_call_operand.vmem [shape: bf16[16,256], index: 1, kind: input, shape index: {}]   ;;  %s3105_s0 = inlined_call_operand.vmem [shape: f32[8,8,16], index: 0, kind: input, shape index: {}]   ;;  %s3106_s2 = inlined_call_operand.vmem [shape: bf16[64,256], index: 2, kind: input, shape index: {}]   ;;  %s3107_s3 = inlined_call_operand.vmem [shape: f32[1,256], index: 3, kind: input, shape index: {}]   ;;  %s3108_s5 = inlined_call_operand.vmem [shape: bf16[64,256], index: 5, kind: input, shape index: {}]   ;;  %s3109_s4 = inlined_call_operand.vmem [shape: bf16[64,256], index: 4, kind: input, shape index: {}]   ;;  %s3110_s6 = inlined_call_operand.vmem [shape: f32[1,256], index: 6, kind: input, shape index: {}]   ;;  %s3111_s7 = inlined_call_operand.vmem [shape: f32[1,64], index: 7, kind: input, shape index: {}]   ;;  %s3112_s8 = inlined_call_operand.<no memory space> [shape: f32[1,1], index: 8, kind: input, shape index: {}]   ;;  %s3113_s9 = inlined_call_operand.vmem [shape: f32[8,1], index: 9, kind: output, shape index: {}]  }
   0x1   :  { %v2048_v0 = vld [vmem:[%s3104_s1 + $0x4] ss:$8 sps:$4 sm:$0xff]   ;;  %164 = vmatprep.mubr.bf16.mxu1 %v2307_v1  ;;  %144 = vmatprep.mubr.bf16.mxu0 %v2307_v1  ;;  %v2050_v2 = vld [vmem:[%s3104_s1] ss:$8 sps:$4 sm:$0xff]   ;;  %v2387_v8 = vld [vmem:[%s3106_s2 + $0x14] ss:$8 sps:$4 sm:$0xff]  }
   0x2   :  { %v70_v3 = vld [vmem:[%s3105_s0 + $0x20] sm:$0xff]  ;;  %v71_v4 = vld [vmem:[%s3105_s0 + $0x28] sm:$0xff]  ;;  %1996 = vmatprep.subr.bf16.mxu1 %v2048_v0  ;;  %112 = vmatprep.subr.bf16.mxu0 %v2048_v0  ;;  %v2393_v9 = vld [vmem:[%s3106_s2 + $0x10] ss:$8 sps:$4 sm:$0xff]   ;;  %v2455_v24 = vshrl.u32 %v63_v20, 7  ;;  %v2486_v53 = vand.u32 127, %v63_v20 }
   0x3   :  { %v76_v5 = vpack.c.bf16 %v71_v4, %v70_v3  ;;  %v2376_v6 = vld [vmem:[%s3106_s2 + $0x4] ss:$8 sps:$4 sm:$0xff]   ;;  %1997 = vmatpush1.bf16.msra.mxu1 %v2050_v2  ;;  %v2381_v7 = vld [vmem:[%s3106_s2] ss:$8 sps:$4 sm:$0xff]   ;;  %113 = vmatpush1.bf16.msra.mxu0 %v2050_v2  ;;  %v72_v10 = vld [vmem:[%s3105_s0 + $0x30] sm:$0xff]  ;;  %vm1896_vm3 = vcmask 7168  }
   0x4   :  { %250 = vmatprep.subr.bf16.mxu1 %v2376_v6  ;;  %527 = vmatprep.subr.bf16.mxu0 %v2376_v6  ;;  %v73_v11 = vld [vmem:[%s3105_s0 + $0x38] sm:$0xff]  ;;  %v66_v12 = vld [vmem:[%s3105_s0] sm:$0xff]  ;;  %v67_v13 = vld [vmem:[%s3105_s0 + $0x8] sm:$0xff]  ;;  %v81_v29 = vsub.s32 0, %v2455_v24  ;;  %v85_v32 = vsub.s32 1, %v2455_v24  ;;  %vm65_vm1 = vcmp.lt.s32.totalorder %v2486_v53, 64 }
   0x5   :  { %v2414_v14 = vld [vmem:[%s3106_s2 + $0x24] ss:$8 sps:$4 sm:$0xff]   ;;  %v74_v15 = vpack.c.bf16 %v67_v13, %v66_v12  ;;  %v77_v16 = vpack.c.bf16 %v73_v11, %v72_v10  ;;  %v2421_v17 = vld [vmem:[%s3106_s2 + $0x20] ss:$8 sps:$4 sm:$0xff]   ;;  %v2428_v18 = vld [vmem:[%s3106_s2 + $0x34] ss:$8 sps:$4 sm:$0xff]  }
   0x6   :  { %1913 = vmatmul.mubr.msk.bf16.vlgmr.msra.gmra.mrb[0].mxu1 %vm99_vm0, %v76_v5  ;;  %v2437_v19 = vld [vmem:[%s3106_s2 + $0x30] ss:$8 sps:$4 sm:$0xff]   ;;  %v61_v31 = vld [vmem:[%s3107_s3] sm:$0x3]  ;;  %s2308_s3 = smov 64  }
   0x7   :  { %251 = vmatpush1.bf16.msra.mxu1 %v2381_v7  ;;  %174 = vmatprep.mubr.bf16.mxu1 %v2307_v1  ;;  %v2476_v36 = vrot.slane %v61_v31, %v81_v29  ;;  %v2482_v38 = vrot.slane %v61_v31, %v85_v32  ;;  %v68_v59 = vld [vmem:[%s3105_s0 + $0x10] sm:$0xff]  ;;  %v69_v60 = vld [vmem:[%s3105_s0 + $0x18] sm:$0xff]  ;;  %v2501_v61 = vld [vmem:[%s3108_s5 + $0x4] ss:$8 sps:$4 sm:$0xff]  }
   0x8   :  { %252 = vmatprep.subr.bf16.mxu1 %v2387_v8  ;;  %1911 = vmatmul.mubr.msk.bf16.vlgmr.msra.gmra.mrb[0].mxu0 %vm99_vm0, %v74_v15  ;;  %v75_v62 = vpack.c.bf16 %v69_v60, %v68_v59  ;;  %v2506_v63 = vld [vmem:[%s3108_s5] ss:$8 sps:$4 sm:$0xff]   ;;  %v2512_v0 = vld [vmem:[%s3108_s5 + $0x14] ss:$8 sps:$4 sm:$0xff]   ;;  %v2519_v2 = vld [vmem:[%s3108_s5 + $0x10] ss:$8 sps:$4 sm:$0xff]  }
   0x9   :  { %528 = vmatpush1.bf16.msra.mxu0 %v2381_v7  ;;  %154 = vmatprep.mubr.bf16.mxu0 %v2307_v1  ;;  %v2526_v3 = vld [vmem:[%s3108_s5 + $0x24] ss:$8 sps:$4 sm:$0xff]   ;;  %v2533_v4 = vld [vmem:[%s3108_s5 + $0x20] ss:$8 sps:$4 sm:$0xff]   ;;  %v2539_v5 = vld [vmem:[%s3108_s5 + $0x34] ss:$8 sps:$4 sm:$0xff]  }
   0xa   :  { %529 = vmatprep.subr.bf16.mxu0 %v2387_v8  ;;  %v2545_v10 = vld [vmem:[%s3108_s5 + $0x30] ss:$8 sps:$4 sm:$0xff]   ;;  %v2551_v11 = vld [vmem:[%s3109_s4 + $0x4] ss:$8 sps:$4 sm:$0xff]   ;;  %v2557_v12 = vld [vmem:[%s3109_s4] ss:$8 sps:$4 sm:$0xff]  }
   0xb   :  { %253 = vmatpush1.bf16.msra.mxu1 %v2393_v9  ;;  %v2563_v13 = vld [vmem:[%s3109_s4 + $0x14] ss:$8 sps:$4 sm:$0xff]   ;;  %v2570_v15 = vld [vmem:[%s3109_s4 + $0x10] ss:$8 sps:$4 sm:$0xff]   ;;  %v2583_v20 = vld [vmem:[%s3109_s4 + $0x20] ss:$8 sps:$4 sm:$0xff]  }
   0xc   :  { %254 = vmatprep.subr.bf16.mxu1 %v2414_v14 }
   0xd   :  { %530 = vmatpush1.bf16.msra.mxu0 %v2393_v9 }
   0xe   :  { %1914 = vmatmul.mubr.msk.bf16.gmra.mrb[4].mxu1 %vm99_vm0, %v77_v16  ;;  %531 = vmatprep.subr.bf16.mxu0 %v2414_v14  ;;  %v2577_v16 = vld [vmem:[%s3109_s4 + $0x24] ss:$8 sps:$4 sm:$0xff]  }
   0xf   :  { %255 = vmatpush1.bf16.msra.mxu1 %v2421_v17  ;;  %282 = vmatprep.mubr.bf16.mxu1 %v2307_v1 }
  0x10   :  { %256 = vmatprep.subr.bf16.mxu1 %v2428_v18  ;;  %1912 = vmatmul.mubr.msk.bf16.gmra.mrb[4].mxu0 %vm99_vm0, %v75_v62 }
  0x11   :  { %532 = vmatpush1.bf16.msra.mxu0 %v2421_v17  ;;  %559 = vmatprep.mubr.bf16.mxu0 %v2307_v1 }
  0x12   :  { %533 = vmatprep.subr.bf16.mxu0 %v2428_v18 }
  0x13   :  { %257 = vmatpush1.bf16.msra.mxu1 %v2437_v19 }
  0x14   :  { %367 = vmatprep.subr.bf16.mxu1 %v2501_v61 }
  0x15   :  { %534 = vmatpush1.bf16.msra.mxu0 %v2437_v19 }
  0x16   :  { %283 = vmatmul.mubr.bf16.vlgmr.msra.gmra.mrb[8].mxu1 %v2307_v1  ;;  %599 = vmatprep.subr.bf16.mxu0 %v2501_v61 }
  0x17   :  { %399 = vmatprep.mubr.bf16.mxu1 %v2307_v1  ;;  %368 = vmatpush1.bf16.msra.mxu1 %v2506_v63 }
  0x18   :  { %369 = vmatprep.subr.bf16.mxu1 %v2512_v0 }
  0x1b   :  { %370 = vmatpush1.bf16.msra.mxu1 %v2519_v2 }
  0x1c   :  { %371 = vmatprep.subr.bf16.mxu1 %v2526_v3 }
  0x1f   :  { %372 = vmatpush1.bf16.msra.mxu1 %v2533_v4 }
  0x20   :  { %373 = vmatprep.subr.bf16.mxu1 %v2539_v5 }
  0x23   :  { %374 = vmatpush1.bf16.msra.mxu1 %v2545_v10 }
  0x24   :  { %455 = vmatprep.subr.bf16.mxu1 %v2551_v11 }
  0x26   :  { %400 = vmatmul.mubr.bf16.vlgmr.msra.gmra.mrb[12].mxu1 %v2307_v1 }
  0x27   :  { %456 = vmatpush1.bf16.msra.mxu1 %v2557_v12  ;;  %487 = vmatprep.mubr.bf16.mxu1 %v2307_v1 }
  0x28   :  { %457 = vmatprep.subr.bf16.mxu1 %v2563_v13 }
  0x2b   :  { %458 = vmatpush1.bf16.msra.mxu1 %v2570_v15 }
  0x2c   :  { %459 = vmatprep.subr.bf16.mxu1 %v2577_v16 }
  0x2f   :  { %460 = vmatpush1.bf16.msra.mxu1 %v2583_v20 }
  0xd9   :  { %v2449_v21 = vpop.f32.mrb[0].mxu1 }
  0xda   :  { %v2451_v22 = vpop.f32.mrb[1].mxu1 }
  0xdb   :  { %v2453_v23 = vpop.f32.mrb[2].mxu1  ;;  %v146_v26 = vpop.f32.mrb[0].mxu0 }
  0xdc   :  { %v2457_v25 = vpop.f32.mrb[3].mxu1  ;;  %v148_v27 = vpop.f32.mrb[1].mxu0  ;;  %v147_v39 = vadd.f32 %v146_v26, %v2476_v36  ;;  %v2589_v26 = vld [vmem:[%s3109_s4 + $0x34] ss:$8 sps:$4 sm:$0xff]  }
  0xdd   :  { %v2459_v28 = vpop.f32.mrb[2].mxu0  ;;  %v149_v40 = vadd.f32 %v148_v27, %v2482_v38  ;;  %v2595_v27 = vld [vmem:[%s3109_s4 + $0x30] ss:$8 sps:$4 sm:$0xff]   ;;  %461 = vmatprep.subr.bf16.mxu1 %v2589_v26 }
  0xde   :  { %v2462_v30 = vpop.f32.mrb[3].mxu0  ;;  %462 = vmatpush1.bf16.msra.mxu1 %v2595_v27 }
  0xdf   :  { %719 = vmatprep.subr.bf16.mxu1 %v2376_v6 }
  0xe1   :  { %v2468_v33 = vpop.f32.mrb[4].mxu1 }
  0xe2   :  { %v2470_v34 = vpop.f32.mrb[5].mxu1 }
  0xe3   :  { %v2472_v35 = vpop.f32.mrb[6].mxu1 }
  0xe4   :  { %v2478_v37 = vpop.f32.mrb[7].mxu1 }
  0xe9   :  { %v284_v41 = vpop.f32.mrb[8].mxu1 }
  0xea   :  { %v291_v42 = vadd.f32 %v284_v41, %v147_v39  ;;  %v286_v43 = vpop.f32.mrb[9].mxu1 }
  0xeb   :  { %v292_v44 = vadd.f32 %v286_v43, %v149_v40  ;;  %v288_v45 = vpop.f32.mrb[10].mxu1 }
  0xec   :  { %v1923_v46 = vmul.f32 -1.442695, %v291_v42  ;;  %v289_v47 = vpop.f32.mrb[11].mxu1 }
  0xed   :  { %v1924_v48 = vmul.f32 -1.442695, %v292_v44 }
  0xee   :  { %2087 = vpow2.f32 %v1923_v46 }
  0xef   :  { %2089 = vpow2.f32 %v1924_v48 }
  0xf0   :  { %2091 = vtanh.f32 %v292_v44  ;;  %v2604_v44 = vpop.f32.mrb[4].mxu0 }
  0xf1   :  { %v2606_v45 = vpop.f32.mrb[5].mxu0 }
  0xf2   :  { %v2608_v46 = vpop.f32.mrb[6].mxu0 }
  0xf3   :  { %v2610_v47 = vpop.f32.mrb[7].mxu0 }
  0xf8   :  { %v2088_v49 = vpop.eup %2087 }
  0xf9   :  { %v2090_v50 = vpop.eup %2089  ;;  %v296_v51 = vadd.f32 1.0, %v2088_v49  ;;  %v62_v49 = vld [vmem:[%s3110_s6] sm:$0x3] }
  0xfa   :  { %v303_v52 = vadd.f32 1.0, %v2090_v50  ;;  %v2092_v54 = vpop.eup %2091  ;;  %v2637_v50 = vrot.slane %v62_v49, %v81_v29 }
  0xfc   :  { %2093 = vrcp.f32 %v303_v52  ;;  %v151_v52 = vadd.f32 %v2459_v28, %v2476_v36 }
  0xfd   :  { %2095 = vrcp.f32 %v296_v51  ;;  %v2641_v51 = vrot.slane %v62_v49, %v85_v32 }
 0x106   :  { %v2094_v55 = vpop.eup %2093 }
 0x107   :  { %v2096_v56 = vpop.eup %2095  ;;  %v306_v57 = vsel %vm65_vm1, %v2092_v54, %v2094_v55  ;;  %v153_v54 = vadd.f32 %v2462_v30, %v2482_v38 }
 0x108   :  { %v308_v58 = vmul.f32 %v2096_v56, %v306_v57  ;;  %v307_v31 = vmul.f32 0.0, %v2096_v56 }
 0x10a   :  { %310 = vrot.lane.b32.xlu0 %v308_v58, %s2308_s3 }
 0x17c   :  { %v311_v39 = vpop.permute.xlu0 %310 }
 0x17d   :  { %v2600_v40 = vadd.f32 %v311_v39, %v307_v31 }
 0x17f   :  { %2097 = vtanh.f32 %v2600_v40 }
 0x189   :  { %v2098_v41 = vpop.eup %2097 }
 0x18a   :  { %v315_v42 = vmul.f32 %v2098_v41, %v306_v57 }
 0x18c   :  { %v408_v43 = vpack.c.bf16 %v315_v42, %v315_v42 }
 0x18e   :  { %410 = vrot.lane.b32.xlu0 %v408_v43, %s2308_s3 }
 0x200   :  { %v411_v48 = vpop.permute.xlu0 %410 }
 0x201   :  { %1941 = vmatmul.mubr.msk.bf16.vlgmr.msra.gmra.mrb[12].mxu1 %vm246_vm2, %v411_v48  ;;  %1944 = vmatmul.mubr.msk.bf16.vlgmr.msra.gmra.mrb[8].mxu0 %vm246_vm2, %v411_v48 }
 0x202   :  { %600 = vmatpush1.bf16.msra.mxu0 %v2506_v63  ;;  %720 = vmatpush1.bf16.msra.mxu1 %v2381_v7 }
 0x203   :  { %601 = vmatprep.subr.bf16.mxu0 %v2512_v0  ;;  %721 = vmatprep.subr.bf16.mxu1 %v2387_v8 }
 0x204   :  { %631 = vmatprep.mubr.bf16.mxu0 %v2307_v1  ;;  %751 = vmatprep.mubr.bf16.mxu1 %v2307_v1 }
 0x206   :  { %602 = vmatpush1.bf16.msra.mxu0 %v2519_v2  ;;  %722 = vmatpush1.bf16.msra.mxu1 %v2393_v9 }
 0x207   :  { %603 = vmatprep.subr.bf16.mxu0 %v2526_v3  ;;  %723 = vmatprep.subr.bf16.mxu1 %v2414_v14 }
 0x20a   :  { %604 = vmatpush1.bf16.msra.mxu0 %v2533_v4  ;;  %724 = vmatpush1.bf16.msra.mxu1 %v2421_v17 }
 0x20b   :  { %605 = vmatprep.subr.bf16.mxu0 %v2539_v5  ;;  %725 = vmatprep.subr.bf16.mxu1 %v2428_v18 }
 0x20e   :  { %606 = vmatpush1.bf16.msra.mxu0 %v2545_v10  ;;  %726 = vmatpush1.bf16.msra.mxu1 %v2437_v19 }
 0x20f   :  { %647 = vmatprep.subr.bf16.mxu0 %v2551_v11  ;;  %791 = vmatprep.subr.bf16.mxu1 %v2501_v61 }
 0x2d4   :  { %v489_v55 = vpop.f32.mrb[12].mxu1  ;;  %v561_v56 = vpop.f32.mrb[8].mxu0 }
 0x2d5   :  { %v1998_v57 = vadd.f32 %v489_v55, %v2637_v50  ;;  %v568_v58 = vadd.f32 %v561_v56, %v151_v52  ;;  %v491_v59 = vpop.f32.mrb[13].mxu1  ;;  %v563_v60 = vpop.f32.mrb[9].mxu0 }
 0x2d6   :  { %v1999_v29 = vadd.f32 %v491_v59, %v2641_v51  ;;  %v569_v62 = vadd.f32 %v563_v60, %v153_v54  ;;  %v493_v31 = vpop.f32.mrb[14].mxu1  ;;  %v565_v24 = vpop.f32.mrb[10].mxu0 }
 0x2d7   :  { %v1942_v32 = vmul.f32 -1.442695, %v1998_v57  ;;  %v494_v39 = vpop.f32.mrb[15].mxu1  ;;  %v566_v41 = vpop.f32.mrb[11].mxu0  ;;  %v1945_v42 = vmul.f32 -1.442695, %v568_v58 }
 0x2d8   :  { %v1943_v28 = vmul.f32 -1.442695, %v1999_v29  ;;  %v1946_v43 = vmul.f32 -1.442695, %v569_v62 }
 0x2d9   :  { %2099 = vpow2.f32 %v1942_v32 }
 0x2da   :  { %2101 = vpow2.f32 %v1943_v28 }
 0x2db   :  { %2103 = vpow2.f32 %v1945_v42 }
 0x2dc   :  { %2105 = vpow2.f32 %v1946_v43 }
 0x2dd   :  { %2107 = vtanh.f32 %v1999_v29 }
 0x2de   :  { %2109 = vtanh.f32 %v569_v62 }
 0x2e3   :  { %v2100_v30 = vpop.eup %2099 }
 0x2e4   :  { %v2102_v48 = vpop.eup %2101  ;;  %v501_v49 = vadd.f32 1.0, %v2100_v30 }
 0x2e5   :  { %v2104_v52 = vpop.eup %2103  ;;  %v508_v55 = vadd.f32 1.0, %v2102_v48 }
 0x2e6   :  { %v2106_v56 = vpop.eup %2105  ;;  %v573_v57 = vadd.f32 1.0, %v2104_v52 }
 0x2e7   :  { %2111 = vrcp.f32 %v508_v55  ;;  %v580_v54 = vadd.f32 1.0, %v2106_v56  ;;  %v2108_v58 = vpop.eup %2107 }
 0x2e8   :  { %2113 = vrcp.f32 %v501_v49  ;;  %v2110_v59 = vpop.eup %2109 }
 0x2e9   :  { %2115 = vrcp.f32 %v580_v54 }
 0x2ea   :  { %2117 = vrcp.f32 %v573_v57 }
 0x2f1   :  { %v2112_v60 = vpop.eup %2111 }
 0x2f2   :  { %v2114_v31 = vpop.eup %2113  ;;  %v511_v24 = vsel %vm65_vm1, %v2108_v58, %v2112_v60  ;;  %v157_v60 = vadd.f32 %v2604_v44, %v2476_v36 }
 0x2f3   :  { %v2116_v32 = vpop.eup %2115  ;;  %v513_v39 = vmul.f32 %v2114_v31, %v511_v24  ;;  %v512_v42 = vmul.f32 0.0, %v2114_v31  ;;  %v159_v31 = vadd.f32 %v2606_v45, %v2482_v38 }
 0x2f4   :  { %v583_v29 = vsel %vm65_vm1, %v2110_v59, %v2116_v32  ;;  %v2118_v62 = vpop.eup %2117 }
 0x2f5   :  { %515 = vrot.lane.b32.xlu1 %v513_v39, %s2308_s3  ;;  %v585_v41 = vmul.f32 %v2118_v62, %v583_v29  ;;  %v584_v30 = vmul.f32 %v2118_v62, %v2600_v40 }
 0x2f9   :  { %587 = vrot.lane.b32.xlu1 %v585_v41, %s2308_s3 }
 0x367   :  { %v516_v28 = vpop.permute.xlu1 %515 }
 0x368   :  { %v2655_v43 = vadd.f32 %v516_v28, %v512_v42 }
 0x36a   :  { %2119 = vtanh.f32 %v2655_v43 }
 0x36b   :  { %v588_v48 = vpop.permute.xlu1 %587 }
 0x36c   :  { %v2659_v49 = vadd.f32 %v588_v48, %v584_v30 }
 0x36e   :  { %2121 = vtanh.f32 %v2659_v49 }
 0x374   :  { %v2120_v52 = vpop.eup %2119 }
 0x375   :  { %v520_v55 = vmul.f32 %v2120_v52, %v511_v24 }
 0x377   :  { %v521_v56 = vpack.c.bf16 %v520_v55, %v520_v55 }
 0x378   :  { %v2122_v54 = vpop.eup %2121 }
 0x379   :  { %594 = vrot.lane.b32.xlu0 %v521_v56, %s2308_s3  ;;  %v592_v57 = vmul.f32 %v2122_v54, %v583_v29 }
 0x37b   :  { %v640_v58 = vpack.c.bf16 %v592_v57, %v592_v57 }
 0x37d   :  { %642 = vrot.lane.b32.xlu1 %v640_v58, %s2308_s3 }
 0x3eb   :  { %v595_v59 = vpop.permute.xlu0 %594 }
 0x3ec   :  { %1947 = vmatmul.mubr.msk.bf16.vlgmr.msra.gmra.mrb[12].mxu0 %vm246_vm2, %v595_v59 }
 0x3ed   :  { %648 = vmatpush1.bf16.msra.mxu0 %v2557_v12  ;;  %679 = vmatprep.mubr.bf16.mxu0 %v2307_v1 }
 0x3ee   :  { %649 = vmatprep.subr.bf16.mxu0 %v2563_v13 }
 0x3ef   :  { %v643_v40 = vpop.permute.xlu1 %642 }
 0x3f0   :  { %1951 = vmatmul.mubr.msk.bf16.vlgmr.msra.gmra.mrb[16].mxu1 %vm246_vm2, %v643_v40 }
 0x3f1   :  { %650 = vmatpush1.bf16.msra.mxu0 %v2570_v15  ;;  %792 = vmatpush1.bf16.msra.mxu1 %v2506_v63 }
 0x3f2   :  { %651 = vmatprep.subr.bf16.mxu0 %v2577_v16  ;;  %793 = vmatprep.subr.bf16.mxu1 %v2512_v0 }
 0x3f3   :  { %823 = vmatprep.mubr.bf16.mxu1 %v2307_v1 }
 0x3f5   :  { %652 = vmatpush1.bf16.msra.mxu0 %v2583_v20  ;;  %794 = vmatpush1.bf16.msra.mxu1 %v2519_v2 }
 0x3f6   :  { %653 = vmatprep.subr.bf16.mxu0 %v2589_v26  ;;  %795 = vmatprep.subr.bf16.mxu1 %v2526_v3 }
 0x3f9   :  { %654 = vmatpush1.bf16.msra.mxu0 %v2595_v27  ;;  %796 = vmatpush1.bf16.msra.mxu1 %v2533_v4 }
 0x3fa   :  { %911 = vmatprep.subr.bf16.mxu0 %v2376_v6  ;;  %797 = vmatprep.subr.bf16.mxu1 %v2539_v5 }
 0x3fc   :  { %1948 = vmatmul.mubr.msk.bf16.vlgmr.msra.gmra.mrb[12].mxu0 %vm246_vm2, %v643_v40 }
 0x3fd   :  { %912 = vmatpush1.bf16.msra.mxu0 %v2381_v7  ;;  %943 = vmatprep.mubr.bf16.mxu0 %v2307_v1 }
 0x3fe   :  { %913 = vmatprep.subr.bf16.mxu0 %v2387_v8  ;;  %798 = vmatpush1.bf16.msra.mxu1 %v2545_v10 }
 0x3ff   :  { %839 = vmatprep.subr.bf16.mxu1 %v2551_v11 }
 0x401   :  { %914 = vmatpush1.bf16.msra.mxu0 %v2393_v9 }
 0x402   :  { %915 = vmatprep.subr.bf16.mxu0 %v2414_v14 }
 0x405   :  { %916 = vmatpush1.bf16.msra.mxu0 %v2421_v17 }
 0x406   :  { %917 = vmatprep.subr.bf16.mxu0 %v2428_v18 }
 0x409   :  { %918 = vmatpush1.bf16.msra.mxu0 %v2437_v19 }
 0x40a   :  { %983 = vmatprep.subr.bf16.mxu0 %v2501_v61 }
 0x4c3   :  { %v753_v24 = vpop.f32.mrb[16].mxu1 }
 0x4c4   :  { %v760_v32 = vadd.f32 %v753_v24, %v157_v60  ;;  %v755_v39 = vpop.f32.mrb[17].mxu1 }
 0x4c5   :  { %v761_v29 = vadd.f32 %v755_v39, %v159_v31  ;;  %v757_v62 = vpop.f32.mrb[18].mxu1 }
 0x4c6   :  { %v1952_v41 = vmul.f32 -1.442695, %v760_v32  ;;  %v758_v42 = vpop.f32.mrb[19].mxu1 }
 0x4c7   :  { %v1953_v28 = vmul.f32 -1.442695, %v761_v29 }
 0x4c8   :  { %2123 = vpow2.f32 %v1952_v41 }
 0x4c9   :  { %2125 = vpow2.f32 %v1953_v28 }
 0x4ca   :  { %2127 = vtanh.f32 %v761_v29 }
 0x4cf   :  { %v681_v30 = vpop.f32.mrb[12].mxu0 }
 0x4d0   :  { %v2000_v48 = vadd.f32 %v681_v30, %v2637_v50  ;;  %v683_v52 = vpop.f32.mrb[13].mxu0 }
 0x4d1   :  { %v2001_v55 = vadd.f32 %v683_v52, %v2641_v51  ;;  %v685_v44 = vpop.f32.mrb[14].mxu0 }
 0x4d2   :  { %v2124_v56 = vpop.eup %2123  ;;  %v1949_v54 = vmul.f32 -1.442695, %v2000_v48  ;;  %v686_v45 = vpop.f32.mrb[15].mxu0 }
 0x4d3   :  { %v2126_v57 = vpop.eup %2125  ;;  %v765_v58 = vadd.f32 1.0, %v2124_v56  ;;  %v1950_v59 = vmul.f32 -1.442695, %v2001_v55 }
 0x4d4   :  { %v772_v40 = vadd.f32 1.0, %v2126_v57  ;;  %2129 = vpow2.f32 %v1949_v54  ;;  %v2128_v60 = vpop.eup %2127 }
 0x4d5   :  { %2131 = vrcp.f32 %v765_v58 }
 0x4d6   :  { %2133 = vrcp.f32 %v772_v40 }
 0x4d7   :  { %2135 = vpow2.f32 %v1950_v59 }
 0x4d8   :  { %2137 = vtanh.f32 %v2001_v55 }
 0x4de   :  { %v2130_v31 = vpop.eup %2129 }
 0x4df   :  { %v2132_v24 = vpop.eup %2131  ;;  %v693_v62 = vadd.f32 1.0, %v2130_v31 }
 0x4e0   :  { %v2134_v32 = vpop.eup %2133  ;;  %v776_v56 = vmul.f32 %v2132_v24, %v2659_v49 }
 0x4e1   :  { %v2136_v39 = vpop.eup %2135  ;;  %v775_v41 = vsel %vm65_vm1, %v2128_v60, %v2134_v32 }
 0x4e2   :  { %v700_v42 = vadd.f32 1.0, %v2136_v39  ;;  %v777_v28 = vmul.f32 %v2132_v24, %v775_v41  ;;  %v2138_v29 = vpop.eup %2137  ;;  %v161_v39 = vadd.f32 %v2608_v46, %v2476_v36 }
 0x4e4   :  { %2139 = vrcp.f32 %v700_v42  ;;  %779 = vrot.lane.b32.xlu1 %v777_v28, %s2308_s3 }
 0x4e5   :  { %2141 = vrcp.f32 %v693_v62  ;;  %v163_v62 = vadd.f32 %v2610_v47, %v2482_v38 }
 0x4ee   :  { %v2140_v30 = vpop.eup %2139 }
 0x4ef   :  { %v2142_v48 = vpop.eup %2141  ;;  %v703_v52 = vsel %vm65_vm1, %v2138_v29, %v2140_v30 }
 0x4f0   :  { %v705_v44 = vmul.f32 %v2142_v48, %v703_v52  ;;  %v704_v57 = vmul.f32 %v2142_v48, %v2655_v43 }
 0x4f2   :  { %707 = vrot.lane.b32.xlu0 %v705_v44, %s2308_s3 }
 0x556   :  { %v780_v54 = vpop.permute.xlu1 %779 }
 0x557   :  { %v2707_v45 = vadd.f32 %v780_v54, %v776_v56 }
 0x559   :  { %2143 = vtanh.f32 %v2707_v45 }
 0x563   :  { %v2144_v55 = vpop.eup %2143 }
 0x564   :  { %v708_v58 = vpop.permute.xlu0 %707  ;;  %v784_v59 = vmul.f32 %v2144_v55, %v775_v41 }
 0x565   :  { %v2711_v40 = vadd.f32 %v708_v58, %v704_v57 }
 0x566   :  { %v832_v60 = vpack.c.bf16 %v784_v59, %v784_v59 }
 0x567   :  { %2145 = vtanh.f32 %v2711_v40 }
 0x568   :  { %834 = vrot.lane.b32.xlu1 %v832_v60, %s2308_s3 }
 0x571   :  { %v2146_v31 = vpop.eup %2145 }
 0x572   :  { %v712_v32 = vmul.f32 %v2146_v31, %v703_v52 }
 0x574   :  { %v713_v49 = vpack.c.bf16 %v712_v32, %v712_v32 }
 0x576   :  { %786 = vrot.lane.b32.xlu0 %v713_v49, %s2308_s3 }
 0x5da   :  { %v835_v24 = vpop.permute.xlu1 %834 }
 0x5db   :  { %1958 = vmatmul.mubr.msk.bf16.vlgmr.msra.gmra.mrb[16].mxu0 %vm246_vm2, %v835_v24 }
 0x5dc   :  { %984 = vmatpush1.bf16.msra.mxu0 %v2506_v63  ;;  %1015 = vmatprep.mubr.bf16.mxu0 %v2307_v1 }
 0x5dd   :  { %985 = vmatprep.subr.bf16.mxu0 %v2512_v0 }
 0x5e0   :  { %986 = vmatpush1.bf16.msra.mxu0 %v2519_v2 }
 0x5e1   :  { %987 = vmatprep.subr.bf16.mxu0 %v2526_v3 }
 0x5e4   :  { %988 = vmatpush1.bf16.msra.mxu0 %v2533_v4 }
 0x5e5   :  { %989 = vmatprep.subr.bf16.mxu0 %v2539_v5 }
 0x5e8   :  { %v787_v43 = vpop.permute.xlu0 %786  ;;  %990 = vmatpush1.bf16.msra.mxu0 %v2545_v10 }
 0x5e9   :  { %1954 = vmatmul.mubr.msk.bf16.vlgmr.msra.gmra.mrb[20].mxu1 %vm246_vm2, %v787_v43  ;;  %1031 = vmatprep.subr.bf16.mxu0 %v2551_v11 }
 0x5ea   :  { %840 = vmatpush1.bf16.msra.mxu1 %v2557_v12  ;;  %871 = vmatprep.mubr.bf16.mxu1 %v2307_v1 }
 0x5eb   :  { %841 = vmatprep.subr.bf16.mxu1 %v2563_v13 }
 0x5ee   :  { %842 = vmatpush1.bf16.msra.mxu1 %v2570_v15 }
 0x5ef   :  { %843 = vmatprep.subr.bf16.mxu1 %v2577_v16 }
 0x5f2   :  { %844 = vmatpush1.bf16.msra.mxu1 %v2583_v20 }
 0x5f3   :  { %845 = vmatprep.subr.bf16.mxu1 %v2589_v26 }
 0x5f6   :  { %846 = vmatpush1.bf16.msra.mxu1 %v2595_v27 }
 0x5f7   :  { %1103 = vmatprep.subr.bf16.mxu1 %v2376_v6 }
 0x5f9   :  { %1955 = vmatmul.mubr.msk.bf16.vlgmr.msra.gmra.mrb[20].mxu1 %vm246_vm2, %v835_v24 }
 0x5fa   :  { %1104 = vmatpush1.bf16.msra.mxu1 %v2381_v7  ;;  %1135 = vmatprep.mubr.bf16.mxu1 %v2307_v1 }
 0x5fb   :  { %1105 = vmatprep.subr.bf16.mxu1 %v2387_v8 }
 0x5fe   :  { %1106 = vmatpush1.bf16.msra.mxu1 %v2393_v9 }
 0x5ff   :  { %1107 = vmatprep.subr.bf16.mxu1 %v2414_v14 }
 0x602   :  { %1108 = vmatpush1.bf16.msra.mxu1 %v2421_v17 }
 0x603   :  { %1109 = vmatprep.subr.bf16.mxu1 %v2428_v18 }
 0x606   :  { %1110 = vmatpush1.bf16.msra.mxu1 %v2437_v19 }
 0x607   :  { %1175 = vmatprep.subr.bf16.mxu1 %v2501_v61 }
 0x6ae   :  { %v945_v41 = vpop.f32.mrb[16].mxu0 }
 0x6af   :  { %v952_v42 = vadd.f32 %v945_v41, %v161_v39  ;;  %v947_v28 = vpop.f32.mrb[17].mxu0 }
 0x6b0   :  { %v953_v29 = vadd.f32 %v947_v28, %v163_v62  ;;  %v949_v30 = vpop.f32.mrb[18].mxu0 }
 0x6b1   :  { %v1959_v48 = vmul.f32 -1.442695, %v952_v42  ;;  %v950_v52 = vpop.f32.mrb[19].mxu0 }
 0x6b2   :  { %v1960_v44 = vmul.f32 -1.442695, %v953_v29 }
 0x6b3   :  { %2147 = vpow2.f32 %v1959_v48 }
 0x6b4   :  { %2149 = vpow2.f32 %v1960_v44 }
 0x6b5   :  { %2151 = vtanh.f32 %v953_v29 }
 0x6bd   :  { %v2148_v56 = vpop.eup %2147 }
 0x6be   :  { %v2150_v54 = vpop.eup %2149  ;;  %v957_v55 = vadd.f32 1.0, %v2148_v56 }
 0x6bf   :  { %v964_v57 = vadd.f32 1.0, %v2150_v54  ;;  %v2152_v46 = vpop.eup %2151 }
 0x6c1   :  { %2153 = vrcp.f32 %v964_v57 }
 0x6c2   :  { %2155 = vrcp.f32 %v957_v55 }
 0x6cb   :  { %v2154_v58 = vpop.eup %2153 }
 0x6cc   :  { %v2156_v47 = vpop.eup %2155  ;;  %v873_v59 = vpop.f32.mrb[20].mxu1  ;;  %v967_v60 = vsel %vm65_vm1, %v2152_v46, %v2154_v58 }
 0x6cd   :  { %v2002_v31 = vadd.f32 %v873_v59, %v2637_v50  ;;  %v875_v32 = vpop.f32.mrb[21].mxu1  ;;  %v969_v49 = vmul.f32 %v2156_v47, %v967_v60  ;;  %v968_v55 = vmul.f32 %v2156_v47, %v2707_v45 }
 0x6ce   :  { %v2003_v24 = vadd.f32 %v875_v32, %v2641_v51  ;;  %v877_v43 = vpop.f32.mrb[22].mxu1 }
 0x6cf   :  { %v1956_v39 = vmul.f32 -1.442695, %v2002_v31  ;;  %v878_v62 = vpop.f32.mrb[23].mxu1  ;;  %971 = vrot.lane.b32.xlu1 %v969_v49, %s2308_s3 }
 0x6d0   :  { %v1957_v41 = vmul.f32 -1.442695, %v2003_v24 }
 0x6d1   :  { %2157 = vpow2.f32 %v1956_v39 }
 0x6d2   :  { %2159 = vpow2.f32 %v1957_v41 }
 0x6d3   :  { %2161 = vtanh.f32 %v2003_v24 }
 0x6db   :  { %v2158_v42 = vpop.eup %2157 }
 0x6dc   :  { %v2160_v28 = vpop.eup %2159  ;;  %v885_v29 = vadd.f32 1.0, %v2158_v42 }
 0x6dd   :  { %v892_v30 = vadd.f32 1.0, %v2160_v28  ;;  %v2162_v48 = vpop.eup %2161 }
 0x6df   :  { %2163 = vrcp.f32 %v892_v30 }
 0x6e0   :  { %2165 = vrcp.f32 %v885_v29 }
 0x6e9   :  { %v2164_v52 = vpop.eup %2163 }
 0x6ea   :  { %v2166_v44 = vpop.eup %2165  ;;  %v895_v56 = vsel %vm65_vm1, %v2162_v48, %v2164_v52 }
 0x6eb   :  { %v897_v54 = vmul.f32 %v2166_v44, %v895_v56  ;;  %v896_v32 = vmul.f32 %v2166_v44, %v2711_v40 }
 0x6ed   :  { %899 = vrot.lane.b32.xlu0 %v897_v54, %s2308_s3 }
 0x741   :  { %v972_v57 = vpop.permute.xlu1 %971 }
 0x742   :  { %v2759_v46 = vadd.f32 %v972_v57, %v968_v55 }
 0x744   :  { %2167 = vtanh.f32 %v2759_v46 }
 0x74e   :  { %v2168_v58 = vpop.eup %2167 }
 0x74f   :  { %v976_v59 = vmul.f32 %v2168_v58, %v967_v60 }
 0x751   :  { %v1024_v31 = vpack.c.bf16 %v976_v59, %v976_v59 }
 0x753   :  { %1026 = vrot.lane.b32.xlu1 %v1024_v31, %s2308_s3 }
 0x75f   :  { %v900_v49 = vpop.permute.xlu0 %899 }
 0x760   :  { %v2764_v24 = vadd.f32 %v900_v49, %v896_v32 }
 0x762   :  { %2169 = vtanh.f32 %v2764_v24 }
 0x76c   :  { %v2170_v43 = vpop.eup %2169 }
 0x76d   :  { %v904_v39 = vmul.f32 %v2170_v43, %v895_v56 }
 0x76f   :  { %v905_v45 = vpack.c.bf16 %v904_v39, %v904_v39 }
 0x771   :  { %978 = vrot.lane.b32.xlu0 %v905_v45, %s2308_s3 }
 0x7c5   :  { %v1027_v47 = vpop.permute.xlu1 %1026 }
 0x7c6   :  { %1965 = vmatmul.mubr.msk.bf16.vlgmr.msra.gmra.mrb[24].mxu1 %vm246_vm2, %v1027_v47 }
 0x7c7   :  { %1176 = vmatpush1.bf16.msra.mxu1 %v2506_v63  ;;  %1207 = vmatprep.mubr.bf16.mxu1 %v2307_v1 }
 0x7c8   :  { %1177 = vmatprep.subr.bf16.mxu1 %v2512_v0 }
 0x7cb   :  { %1178 = vmatpush1.bf16.msra.mxu1 %v2519_v2 }
 0x7cc   :  { %1179 = vmatprep.subr.bf16.mxu1 %v2526_v3 }
 0x7cf   :  { %1180 = vmatpush1.bf16.msra.mxu1 %v2533_v4 }
 0x7d0   :  { %1181 = vmatprep.subr.bf16.mxu1 %v2539_v5 }
 0x7d3   :  { %1182 = vmatpush1.bf16.msra.mxu1 %v2545_v10 }
 0x7d4   :  { %1223 = vmatprep.subr.bf16.mxu1 %v2551_v11 }
 0x7e3   :  { %v979_v40 = vpop.permute.xlu0 %978 }
 0x7e4   :  { %1961 = vmatmul.mubr.msk.bf16.vlgmr.msra.gmra.mrb[20].mxu0 %vm246_vm2, %v979_v40 }
 0x7e5   :  { %1032 = vmatpush1.bf16.msra.mxu0 %v2557_v12  ;;  %1063 = vmatprep.mubr.bf16.mxu0 %v2307_v1 }
 0x7e6   :  { %1033 = vmatprep.subr.bf16.mxu0 %v2563_v13 }
 0x7e9   :  { %1034 = vmatpush1.bf16.msra.mxu0 %v2570_v15 }
 0x7ea   :  { %1035 = vmatprep.subr.bf16.mxu0 %v2577_v16 }
 0x7ed   :  { %1036 = vmatpush1.bf16.msra.mxu0 %v2583_v20 }
 0x7ee   :  { %1037 = vmatprep.subr.bf16.mxu0 %v2589_v26 }
 0x7f1   :  { %1038 = vmatpush1.bf16.msra.mxu0 %v2595_v27 }
 0x7f2   :  { %1295 = vmatprep.subr.bf16.mxu0 %v2376_v6  ;;  %v167_v6 = vadd.f32 %v2449_v21, %v2476_v36 }
 0x7f4   :  { %1962 = vmatmul.mubr.msk.bf16.vlgmr.msra.gmra.mrb[20].mxu0 %vm246_vm2, %v1027_v47 }
 0x7f5   :  { %1296 = vmatpush1.bf16.msra.mxu0 %v2381_v7  ;;  %1327 = vmatprep.mubr.bf16.mxu0 %v2307_v1  ;;  %v169_v7 = vadd.f32 %v2451_v22, %v2482_v38 }
 0x7f6   :  { %1297 = vmatprep.subr.bf16.mxu0 %v2387_v8 }
 0x7f9   :  { %1298 = vmatpush1.bf16.msra.mxu0 %v2393_v9 }
 0x7fa   :  { %1299 = vmatprep.subr.bf16.mxu0 %v2414_v14 }
 0x7fd   :  { %1300 = vmatpush1.bf16.msra.mxu0 %v2421_v17 }
 0x7fe   :  { %1301 = vmatprep.subr.bf16.mxu0 %v2428_v18 }
 0x801   :  { %1302 = vmatpush1.bf16.msra.mxu0 %v2437_v19 }
 0x802   :  { %1367 = vmatprep.subr.bf16.mxu0 %v2501_v61 }
 0x899   :  { %v1137_v60 = vpop.f32.mrb[24].mxu1 }
 0x89a   :  { %v1144_v8 = vadd.f32 %v1137_v60, %v167_v6  ;;  %v1139_v62 = vpop.f32.mrb[25].mxu1 }
 0x89b   :  { %v1145_v9 = vadd.f32 %v1139_v62, %v169_v7  ;;  %v1141_v41 = vpop.f32.mrb[26].mxu1 }
 0x89c   :  { %v1966_v14 = vmul.f32 -1.442695, %v1144_v8  ;;  %v1142_v42 = vpop.f32.mrb[27].mxu1 }
 0x89d   :  { %v1967_v17 = vmul.f32 -1.442695, %v1145_v9 }
 0x89e   :  { %2171 = vpow2.f32 %v1966_v14 }
 0x89f   :  { %2173 = vpow2.f32 %v1967_v17 }
 0x8a0   :  { %2175 = vtanh.f32 %v1145_v9 }
 0x8a8   :  { %v2172_v18 = vpop.eup %2171 }
 0x8a9   :  { %v2174_v19 = vpop.eup %2173  ;;  %v1149_v28 = vadd.f32 1.0, %v2172_v18 }
 0x8aa   :  { %v1156_v29 = vadd.f32 1.0, %v2174_v19  ;;  %v2176_v21 = vpop.eup %2175 }
 0x8ac   :  { %2177 = vrcp.f32 %v1156_v29 }
 0x8ad   :  { %2179 = vrcp.f32 %v1149_v28 }
 0x8b6   :  { %v2178_v30 = vpop.eup %2177 }
 0x8b7   :  { %v2180_v22 = vpop.eup %2179  ;;  %v1159_v48 = vsel %vm65_vm1, %v2176_v21, %v2178_v30 }
 0x8b8   :  { %v1161_v52 = vmul.f32 %v2180_v22, %v1159_v48  ;;  %v1160_v60 = vmul.f32 %v2180_v22, %v2759_v46 }
 0x8ba   :  { %1163 = vrot.lane.b32.xlu1 %v1161_v52, %s2308_s3 }
 0x8c7   :  { %v1065_v44 = vpop.f32.mrb[20].mxu0 }
 0x8c8   :  { %v2004_v56 = vadd.f32 %v1065_v44, %v2637_v50  ;;  %v1067_v54 = vpop.f32.mrb[21].mxu0 }
 0x8c9   :  { %v2005_v55 = vadd.f32 %v1067_v54, %v2641_v51  ;;  %v1069_v57 = vpop.f32.mrb[22].mxu0 }
 0x8ca   :  { %v1963_v58 = vmul.f32 -1.442695, %v2004_v56  ;;  %v1070_v59 = vpop.f32.mrb[23].mxu0 }
 0x8cb   :  { %v1964_v31 = vmul.f32 -1.442695, %v2005_v55 }
 0x8cc   :  { %2181 = vpow2.f32 %v1963_v58 }
 0x8cd   :  { %2183 = vpow2.f32 %v1964_v31 }
 0x8ce   :  { %2185 = vtanh.f32 %v2005_v55 }
 0x8d6   :  { %v2182_v32 = vpop.eup %2181 }
 0x8d7   :  { %v2184_v49 = vpop.eup %2183  ;;  %v1077_v43 = vadd.f32 1.0, %v2182_v32 }
 0x8d8   :  { %v1084_v39 = vadd.f32 1.0, %v2184_v49  ;;  %v2186_v45 = vpop.eup %2185 }
 0x8da   :  { %2187 = vrcp.f32 %v1084_v39 }
 0x8db   :  { %2189 = vrcp.f32 %v1077_v43 }
 0x8e4   :  { %v2188_v47 = vpop.eup %2187 }
 0x8e5   :  { %v2190_v40 = vpop.eup %2189  ;;  %v1087_v6 = vsel %vm65_vm1, %v2186_v45, %v2188_v47 }
 0x8e6   :  { %v1089_v7 = vmul.f32 %v2190_v40, %v1087_v6  ;;  %v1088_v42 = vmul.f32 %v2190_v40, %v2764_v24 }
 0x8e8   :  { %1091 = vrot.lane.b32.xlu0 %v1089_v7, %s2308_s3 }
 0x92c   :  { %v1164_v8 = vpop.permute.xlu1 %1163 }
 0x92d   :  { %v2811_v62 = vadd.f32 %v1164_v8, %v1160_v60 }
 0x92f   :  { %2191 = vtanh.f32 %v2811_v62 }
 0x939   :  { %v2192_v9 = vpop.eup %2191 }
 0x93a   :  { %v1168_v41 = vmul.f32 %v2192_v9, %v1159_v48 }
 0x93c   :  { %v1216_v14 = vpack.c.bf16 %v1168_v41, %v1168_v41 }
 0x93e   :  { %1218 = vrot.lane.b32.xlu1 %v1216_v14, %s2308_s3 }
 0x95a   :  { %v1092_v17 = vpop.permute.xlu0 %1091 }
 0x95b   :  { %v2816_v18 = vadd.f32 %v1092_v17, %v1088_v42 }
 0x95d   :  { %2193 = vtanh.f32 %v2816_v18 }
 0x967   :  { %v2194_v19 = vpop.eup %2193 }
 0x968   :  { %v1096_v28 = vmul.f32 %v2194_v19, %v1087_v6 }
 0x96a   :  { %v1097_v46 = vpack.c.bf16 %v1096_v28, %v1096_v28 }
 0x96c   :  { %1170 = vrot.lane.b32.xlu0 %v1097_v46, %s2308_s3 }
 0x9b0   :  { %v1219_v29 = vpop.permute.xlu1 %1218 }
 0x9b1   :  { %1972 = vmatmul.mubr.msk.bf16.vlgmr.msra.gmra.mrb[24].mxu0 %vm246_vm2, %v1219_v29 }
 0x9b2   :  { %1368 = vmatpush1.bf16.msra.mxu0 %v2506_v63  ;;  %1399 = vmatprep.mubr.bf16.mxu0 %v2307_v1  ;;  %v2842_v63 = vld [vmem:[%s3106_s2 + $0x4] ss:$8 sps:$4 sm:$0xff]  }
 0x9b3   :  { %1369 = vmatprep.subr.bf16.mxu0 %v2512_v0  ;;  %v2849_v0 = vld [vmem:[%s3106_s2] ss:$8 sps:$4 sm:$0xff]  }
 0x9b6   :  { %1370 = vmatpush1.bf16.msra.mxu0 %v2519_v2  ;;  %v2856_v2 = vld [vmem:[%s3106_s2 + $0x14] ss:$8 sps:$4 sm:$0xff]  }
 0x9b7   :  { %1371 = vmatprep.subr.bf16.mxu0 %v2526_v3  ;;  %v2862_v3 = vld [vmem:[%s3106_s2 + $0x10] ss:$8 sps:$4 sm:$0xff]  }
 0x9ba   :  { %1372 = vmatpush1.bf16.msra.mxu0 %v2533_v4  ;;  %v2868_v4 = vld [vmem:[%s3106_s2 + $0x24] ss:$8 sps:$4 sm:$0xff]  }
 0x9bb   :  { %1373 = vmatprep.subr.bf16.mxu0 %v2539_v5  ;;  %v2874_v5 = vld [vmem:[%s3106_s2 + $0x20] ss:$8 sps:$4 sm:$0xff]  }
 0x9be   :  { %1374 = vmatpush1.bf16.msra.mxu0 %v2545_v10  ;;  %v2880_v10 = vld [vmem:[%s3106_s2 + $0x34] ss:$8 sps:$4 sm:$0xff]  }
 0x9bf   :  { %1415 = vmatprep.subr.bf16.mxu0 %v2551_v11  ;;  %v2886_v11 = vld [vmem:[%s3106_s2 + $0x30] ss:$8 sps:$4 sm:$0xff]  }
 0x9de   :  { %v1171_v24 = vpop.permute.xlu0 %1170 }
 0x9df   :  { %1968 = vmatmul.mubr.msk.bf16.vlgmr.msra.gmra.mrb[28].mxu1 %vm246_vm2, %v1171_v24 }
 0x9e0   :  { %1224 = vmatpush1.bf16.msra.mxu1 %v2557_v12  ;;  %1255 = vmatprep.mubr.bf16.mxu1 %v2307_v1  ;;  %v171_v12 = vadd.f32 %v2453_v23, %v2476_v36 }
 0x9e1   :  { %1225 = vmatprep.subr.bf16.mxu1 %v2563_v13  ;;  %v173_v13 = vadd.f32 %v2457_v25, %v2482_v38 }
 0x9e4   :  { %1226 = vmatpush1.bf16.msra.mxu1 %v2570_v15 }
 0x9e5   :  { %1227 = vmatprep.subr.bf16.mxu1 %v2577_v16 }
 0x9e8   :  { %1228 = vmatpush1.bf16.msra.mxu1 %v2583_v20 }
 0x9e9   :  { %1229 = vmatprep.subr.bf16.mxu1 %v2589_v26 }
 0x9ec   :  { %1230 = vmatpush1.bf16.msra.mxu1 %v2595_v27 }
 0x9ed   :  { %1487 = vmatprep.subr.bf16.mxu1 %v2842_v63 }
 0x9ef   :  { %1969 = vmatmul.mubr.msk.bf16.vlgmr.msra.gmra.mrb[28].mxu1 %vm246_vm2, %v1219_v29 }
 0x9f0   :  { %1488 = vmatpush1.bf16.msra.mxu1 %v2849_v0  ;;  %1519 = vmatprep.mubr.bf16.mxu1 %v2307_v1 }
 0x9f1   :  { %1489 = vmatprep.subr.bf16.mxu1 %v2856_v2 }
 0x9f4   :  { %1490 = vmatpush1.bf16.msra.mxu1 %v2862_v3 }
 0x9f5   :  { %1491 = vmatprep.subr.bf16.mxu1 %v2868_v4 }
 0x9f8   :  { %1492 = vmatpush1.bf16.msra.mxu1 %v2874_v5 }
 0x9f9   :  { %1493 = vmatprep.subr.bf16.mxu1 %v2880_v10 }
 0x9fc   :  { %1494 = vmatpush1.bf16.msra.mxu1 %v2886_v11 }
 0x9fd   :  { %1559 = vmatprep.subr.bf16.mxu1 %v2501_v61 }
 0xa84   :  { %v1329_v15 = vpop.f32.mrb[24].mxu0 }
 0xa85   :  { %v1336_v16 = vadd.f32 %v1329_v15, %v171_v12  ;;  %v1331_v20 = vpop.f32.mrb[25].mxu0 }
 0xa86   :  { %v1337_v21 = vadd.f32 %v1331_v20, %v173_v13  ;;  %v1333_v30 = vpop.f32.mrb[26].mxu0 }
 0xa87   :  { %v1973_v22 = vmul.f32 -1.442695, %v1336_v16  ;;  %v1334_v48 = vpop.f32.mrb[27].mxu0  ;;  %v2916_v30 = vld [vmem:[%s3108_s5] ss:$8 sps:$4 sm:$0xff]  }
 0xa88   :  { %v1974_v52 = vmul.f32 -1.442695, %v1337_v21  ;;  %v2935_v48 = vld [vmem:[%s3108_s5 + $0x24] ss:$8 sps:$4 sm:$0xff]  }
 0xa89   :  { %2195 = vpow2.f32 %v1973_v22  ;;  %v2929_v22 = vld [vmem:[%s3108_s5 + $0x10] ss:$8 sps:$4 sm:$0xff]  }
 0xa8a   :  { %2197 = vpow2.f32 %v1974_v52  ;;  %v2941_v52 = vld [vmem:[%s3108_s5 + $0x20] ss:$8 sps:$4 sm:$0xff]  }
 0xa8b   :  { %2199 = vtanh.f32 %v1337_v21 }
 0xa93   :  { %v2196_v44 = vpop.eup %2195 }
 0xa94   :  { %v2198_v56 = vpop.eup %2197  ;;  %v1341_v54 = vadd.f32 1.0, %v2196_v44  ;;  %v2947_v44 = vld [vmem:[%s3108_s5 + $0x34] ss:$8 sps:$4 sm:$0xff]  }
 0xa95   :  { %v1348_v61 = vadd.f32 1.0, %v2198_v56  ;;  %v2200_v23 = vpop.eup %2199  ;;  %v2953_v56 = vld [vmem:[%s3108_s5 + $0x30] ss:$8 sps:$4 sm:$0xff]  }
 0xa97   :  { %2201 = vrcp.f32 %v1348_v61 }
 0xa98   :  { %2203 = vrcp.f32 %v1341_v54  ;;  %v2959_v54 = vld [vmem:[%s3109_s4 + $0x4] ss:$8 sps:$4 sm:$0xff]  }
 0xaa1   :  { %v2202_v55 = vpop.eup %2201 }
 0xaa2   :  { %v2204_v25 = vpop.eup %2203  ;;  %v1351_v57 = vsel %vm65_vm1, %v2200_v23, %v2202_v55  ;;  %v2966_v23 = vld [vmem:[%s3109_s4] ss:$8 sps:$4 sm:$0xff]   ;;  %v2973_v55 = vld [vmem:[%s3109_s4 + $0x14] ss:$8 sps:$4 sm:$0xff]  }
 0xaa3   :  { %v1353_v58 = vmul.f32 %v2204_v25, %v1351_v57  ;;  %v1352_v17 = vmul.f32 %v2204_v25, %v2811_v62  ;;  %v2979_v25 = vld [vmem:[%s3109_s4 + $0x10] ss:$8 sps:$4 sm:$0xff]  }
 0xaa5   :  { %1355 = vrot.lane.b32.xlu1 %v1353_v58, %s2308_s3  ;;  %v2991_v58 = vld [vmem:[%s3109_s4 + $0x20] ss:$8 sps:$4 sm:$0xff]  }
 0xac2   :  { %v1257_v59 = vpop.f32.mrb[28].mxu1 }
 0xac3   :  { %v2006_v31 = vadd.f32 %v1257_v59, %v2637_v50  ;;  %v1259_v32 = vpop.f32.mrb[29].mxu1 }
 0xac4   :  { %v2007_v49 = vadd.f32 %v1259_v32, %v2641_v51  ;;  %v1261_v43 = vpop.f32.mrb[30].mxu1 }
 0xac5   :  { %v1970_v39 = vmul.f32 -1.442695, %v2006_v31  ;;  %v1262_v45 = vpop.f32.mrb[31].mxu1 }
 0xac6   :  { %v1971_v47 = vmul.f32 -1.442695, %v2007_v49 }
 0xac7   :  { %2205 = vpow2.f32 %v1970_v39 }
 0xac8   :  { %2207 = vpow2.f32 %v1971_v47 }
 0xac9   :  { %2209 = vtanh.f32 %v2007_v49 }
 0xad1   :  { %v2206_v40 = vpop.eup %2205 }
 0xad2   :  { %v2208_v6 = vpop.eup %2207  ;;  %v1269_v7 = vadd.f32 1.0, %v2206_v40 }
 0xad3   :  { %v1276_v60 = vadd.f32 1.0, %v2208_v6  ;;  %v2210_v8 = vpop.eup %2209 }
 0xad5   :  { %2211 = vrcp.f32 %v1276_v60 }
 0xad6   :  { %2213 = vrcp.f32 %v1269_v7 }
 0xadf   :  { %v2212_v9 = vpop.eup %2211 }
 0xae0   :  { %v2214_v41 = vpop.eup %2213  ;;  %v1279_v14 = vsel %vm65_vm1, %v2210_v8, %v2212_v9 }
 0xae1   :  { %v1281_v42 = vmul.f32 %v2214_v41, %v1279_v14  ;;  %v1280_v12 = vmul.f32 %v2214_v41, %v2816_v18  ;;  %v2923_v18 = vld [vmem:[%s3108_s5 + $0x14] ss:$8 sps:$4 sm:$0xff]  }
 0xae3   :  { %1283 = vrot.lane.b32.xlu0 %v1281_v42, %s2308_s3 }
 0xb17   :  { %v1356_v19 = vpop.permute.xlu1 %1355 }
 0xb18   :  { %v2903_v28 = vadd.f32 %v1356_v19, %v1352_v17 }
 0xb1a   :  { %2215 = vtanh.f32 %v2903_v28 }
 0xb24   :  { %v2216_v46 = vpop.eup %2215 }
 0xb25   :  { %v1360_v29 = vmul.f32 %v2216_v46, %v1351_v57  ;;  %v2985_v57 = vld [vmem:[%s3109_s4 + $0x24] ss:$8 sps:$4 sm:$0xff]  }
 0xb27   :  { %v1408_v24 = vpack.c.bf16 %v1360_v29, %v1360_v29 }
 0xb29   :  { %1410 = vrot.lane.b32.xlu1 %v1408_v24, %s2308_s3 }
 0xb55   :  { %v1284_v13 = vpop.permute.xlu0 %1283 }
 0xb56   :  { %v2908_v15 = vadd.f32 %v1284_v13, %v1280_v12 }
 0xb58   :  { %2217 = vtanh.f32 %v2908_v15 }
 0xb62   :  { %v2218_v16 = vpop.eup %2217 }
 0xb63   :  { %v1288_v20 = vmul.f32 %v2218_v16, %v1279_v14 }
 0xb65   :  { %v1289_v62 = vpack.c.bf16 %v1288_v20, %v1288_v20 }
 0xb67   :  { %1362 = vrot.lane.b32.xlu0 %v1289_v62, %s2308_s3 }
 0xb9b   :  { %v1411_v21 = vpop.permute.xlu1 %1410 }
 0xb9c   :  { %1979 = vmatmul.mubr.msk.bf16.vlgmr.msra.gmra.mrb[32].mxu1 %vm246_vm2, %v1411_v21 }
 0xb9d   :  { %1560 = vmatpush1.bf16.msra.mxu1 %v2916_v30  ;;  %1591 = vmatprep.mubr.bf16.mxu1 %v2307_v1 }
 0xb9e   :  { %1561 = vmatprep.subr.bf16.mxu1 %v2923_v18 }
 0xba1   :  { %1562 = vmatpush1.bf16.msra.mxu1 %v2929_v22 }
 0xba2   :  { %1563 = vmatprep.subr.bf16.mxu1 %v2935_v48 }
 0xba5   :  { %1564 = vmatpush1.bf16.msra.mxu1 %v2941_v52 }
 0xba6   :  { %1565 = vmatprep.subr.bf16.mxu1 %v2947_v44 }
 0xba9   :  { %1566 = vmatpush1.bf16.msra.mxu1 %v2953_v56 }
 0xbaa   :  { %1607 = vmatprep.subr.bf16.mxu1 %v2959_v54 }
 0xbd9   :  { %v1363_v61 = vpop.permute.xlu0 %1362 }
 0xbda   :  { %1975 = vmatmul.mubr.msk.bf16.vlgmr.msra.gmra.mrb[28].mxu0 %vm246_vm2, %v1363_v61 }
 0xbdb   :  { %1416 = vmatpush1.bf16.msra.mxu0 %v2966_v23  ;;  %1447 = vmatprep.mubr.bf16.mxu0 %v2307_v1 }
 0xbdc   :  { %1417 = vmatprep.subr.bf16.mxu0 %v2973_v55 }
 0xbdf   :  { %1418 = vmatpush1.bf16.msra.mxu0 %v2979_v25 }
 0xbe0   :  { %1419 = vmatprep.subr.bf16.mxu0 %v2985_v57 }
 0xbe3   :  { %1420 = vmatpush1.bf16.msra.mxu0 %v2991_v58 }
 0xbe4   :  { %1421 = vmatprep.subr.bf16.mxu0 %v2589_v26  ;;  %v2304_v26 = vld [vmem:[%s3108_s5 + $0x4] ss:$8 sps:$4 sm:$0xff]  }
 0xbe7   :  { %1422 = vmatpush1.bf16.msra.mxu0 %v2595_v27  ;;  %v177_v27 = vadd.f32 %v2468_v33, %v2476_v36 }
 0xbe8   :  { %1679 = vmatprep.subr.bf16.mxu0 %v2842_v63  ;;  %v179_v63 = vadd.f32 %v2470_v34, %v2482_v38 }
 0xbea   :  { %1976 = vmatmul.mubr.msk.bf16.vlgmr.msra.gmra.mrb[28].mxu0 %vm246_vm2, %v1411_v21 }
 0xbeb   :  { %1680 = vmatpush1.bf16.msra.mxu0 %v2849_v0  ;;  %1711 = vmatprep.mubr.bf16.mxu0 %v2307_v1 }
 0xbec   :  { %1681 = vmatprep.subr.bf16.mxu0 %v2856_v2 }
 0xbef   :  { %1682 = vmatpush1.bf16.msra.mxu0 %v2862_v3 }
 0xbf0   :  { %1683 = vmatprep.subr.bf16.mxu0 %v2868_v4 }
 0xbf3   :  { %1684 = vmatpush1.bf16.msra.mxu0 %v2874_v5 }
 0xbf4   :  { %1685 = vmatprep.subr.bf16.mxu0 %v2880_v10 }
 0xbf7   :  { %1686 = vmatpush1.bf16.msra.mxu0 %v2886_v11 }
 0xbf8   :  { %1751 = vmatprep.subr.bf16.mxu0 %v2304_v26 }
 0xc6f   :  { %v1521_v0 = vpop.f32.mrb[32].mxu1 }
 0xc70   :  { %v1528_v2 = vadd.f32 %v1521_v0, %v177_v27  ;;  %v1523_v3 = vpop.f32.mrb[33].mxu1 }
 0xc71   :  { %v1529_v4 = vadd.f32 %v1523_v3, %v179_v63  ;;  %v1525_v5 = vpop.f32.mrb[34].mxu1 }
 0xc72   :  { %v1980_v59 = vmul.f32 -1.442695, %v1528_v2  ;;  %v1526_v10 = vpop.f32.mrb[35].mxu1 }
 0xc73   :  { %v1981_v31 = vmul.f32 -1.442695, %v1529_v4 }
 0xc74   :  { %2219 = vpow2.f32 %v1980_v59 }
 0xc75   :  { %2221 = vpow2.f32 %v1981_v31 }
 0xc76   :  { %2223 = vtanh.f32 %v1529_v4 }
 0xc7e   :  { %v2220_v11 = vpop.eup %2219 }
 0xc7f   :  { %v2222_v32 = vpop.eup %2221  ;;  %v1533_v49 = vadd.f32 1.0, %v2220_v11 }
 0xc80   :  { %v1540_v43 = vadd.f32 1.0, %v2222_v32  ;;  %v2224_v33 = vpop.eup %2223 }
 0xc82   :  { %2225 = vrcp.f32 %v1540_v43 }
 0xc83   :  { %2227 = vrcp.f32 %v1533_v49 }
 0xc8c   :  { %v2226_v39 = vpop.eup %2225 }
 0xc8d   :  { %v2228_v34 = vpop.eup %2227  ;;  %v1543_v45 = vsel %vm65_vm1, %v2224_v33, %v2226_v39 }
 0xc8e   :  { %v1545_v47 = vmul.f32 %v2228_v34, %v1543_v45  ;;  %v1544_v20 = vmul.f32 %v2228_v34, %v2903_v28 }
 0xc90   :  { %1547 = vrot.lane.b32.xlu1 %v1545_v47, %s2308_s3 }
 0xcbd   :  { %v1449_v40 = vpop.f32.mrb[28].mxu0 }
 0xcbe   :  { %v2008_v6 = vadd.f32 %v1449_v40, %v2637_v50  ;;  %v1451_v7 = vpop.f32.mrb[29].mxu0 }
 0xcbf   :  { %v2009_v60 = vadd.f32 %v1451_v7, %v2641_v51  ;;  %v1453_v8 = vpop.f32.mrb[30].mxu0 }
 0xcc0   :  { %v1977_v9 = vmul.f32 -1.442695, %v2008_v6  ;;  %v1454_v41 = vpop.f32.mrb[31].mxu0 }
 0xcc1   :  { %v1978_v14 = vmul.f32 -1.442695, %v2009_v60 }
 0xcc2   :  { %2229 = vpow2.f32 %v1977_v9 }
 0xcc3   :  { %2231 = vpow2.f32 %v1978_v14 }
 0xcc4   :  { %2233 = vtanh.f32 %v2009_v60 }
 0xccc   :  { %v2230_v42 = vpop.eup %2229 }
 0xccd   :  { %v2232_v17 = vpop.eup %2231  ;;  %v1461_v19 = vadd.f32 1.0, %v2230_v42 }
 0xcce   :  { %v1468_v46 = vadd.f32 1.0, %v2232_v17  ;;  %v2234_v29 = vpop.eup %2233 }
 0xcd0   :  { %2235 = vrcp.f32 %v1468_v46 }
 0xcd1   :  { %2237 = vrcp.f32 %v1461_v19 }
 0xcda   :  { %v2236_v24 = vpop.eup %2235 }
 0xcdb   :  { %v2238_v12 = vpop.eup %2237  ;;  %v1471_v13 = vsel %vm65_vm1, %v2234_v29, %v2236_v24 }
 0xcdc   :  { %v1473_v16 = vmul.f32 %v2238_v12, %v1471_v13  ;;  %v1472_v63 = vmul.f32 %v2238_v12, %v2908_v15 }
 0xcde   :  { %1475 = vrot.lane.b32.xlu0 %v1473_v16, %s2308_s3 }
 0xd02   :  { %v1548_v62 = vpop.permute.xlu1 %1547 }
 0xd03   :  { %v3022_v21 = vadd.f32 %v1548_v62, %v1544_v20 }
 0xd05   :  { %2239 = vtanh.f32 %v3022_v21 }
 0xd0f   :  { %v2240_v61 = vpop.eup %2239 }
 0xd10   :  { %v1552_v26 = vmul.f32 %v2240_v61, %v1543_v45 }
 0xd12   :  { %v1600_v27 = vpack.c.bf16 %v1552_v26, %v1552_v26 }
 0xd14   :  { %1602 = vrot.lane.b32.xlu1 %v1600_v27, %s2308_s3 }
 0xd50   :  { %v1476_v0 = vpop.permute.xlu0 %1475 }
 0xd51   :  { %v3027_v2 = vadd.f32 %v1476_v0, %v1472_v63 }
 0xd53   :  { %2241 = vtanh.f32 %v3027_v2 }
 0xd5d   :  { %v2242_v3 = vpop.eup %2241 }
 0xd5e   :  { %v1480_v4 = vmul.f32 %v2242_v3, %v1471_v13 }
 0xd60   :  { %v1481_v28 = vpack.c.bf16 %v1480_v4, %v1480_v4 }
 0xd62   :  { %1554 = vrot.lane.b32.xlu0 %v1481_v28, %s2308_s3 }
 0xd86   :  { %v1603_v5 = vpop.permute.xlu1 %1602 }
 0xd87   :  { %1986 = vmatmul.mubr.msk.bf16.vlgmr.msra.gmra.mrb[32].mxu0 %vm246_vm2, %v1603_v5 }
 0xd88   :  { %1752 = vmatpush1.bf16.msra.mxu0 %v2916_v30  ;;  %1783 = vmatprep.mubr.bf16.mxu0 %v2307_v1  ;;  %v3051_v30 = vld [vmem:[%s3109_s4 + $0x34] ss:$8 sps:$4 sm:$0xff]  }
 0xd89   :  { %1753 = vmatprep.subr.bf16.mxu0 %v2923_v18  ;;  %v3057_v18 = vld [vmem:[%s3109_s4 + $0x30] ss:$8 sps:$4 sm:$0xff]  }
 0xd8c   :  { %1754 = vmatpush1.bf16.msra.mxu0 %v2929_v22  ;;  %v181_v22 = vadd.f32 %v2472_v35, %v2476_v36 }
 0xd8d   :  { %1755 = vmatprep.subr.bf16.mxu0 %v2935_v48  ;;  %v183_v48 = vadd.f32 %v2478_v37, %v2482_v38 }
 0xd90   :  { %1756 = vmatpush1.bf16.msra.mxu0 %v2941_v52 }
 0xd91   :  { %1757 = vmatprep.subr.bf16.mxu0 %v2947_v44 }
 0xd94   :  { %1758 = vmatpush1.bf16.msra.mxu0 %v2953_v56 }
 0xd95   :  { %1799 = vmatprep.subr.bf16.mxu0 %v2959_v54 }
 0xdd4   :  { %v1555_v15 = vpop.permute.xlu0 %1554 }
 0xdd5   :  { %1982 = vmatmul.mubr.msk.bf16.vlgmr.msra.gmra.mrb[36].mxu1 %vm246_vm2, %v1555_v15 }
 0xdd6   :  { %1608 = vmatpush1.bf16.msra.mxu1 %v2966_v23  ;;  %1639 = vmatprep.mubr.bf16.mxu1 %v2307_v1 }
 0xdd7   :  { %1609 = vmatprep.subr.bf16.mxu1 %v2973_v55 }
 0xdda   :  { %1610 = vmatpush1.bf16.msra.mxu1 %v2979_v25 }
 0xddb   :  { %1611 = vmatprep.subr.bf16.mxu1 %v2985_v57 }
 0xdde   :  { %1612 = vmatpush1.bf16.msra.mxu1 %v2991_v58 }
 0xddf   :  { %1613 = vmatprep.subr.bf16.mxu1 %v3051_v30 }
 0xde2   :  { %1614 = vmatpush1.bf16.msra.mxu1 %v3057_v18 }
 0xde5   :  { %1983 = vmatmul.mubr.msk.bf16.vlgmr.msra.gmra.mrb[36].mxu1 %vm246_vm2, %v1603_v5 }
 0xe5a   :  { %v1713_v52 = vpop.f32.mrb[32].mxu0 }
 0xe5b   :  { %v1720_v44 = vadd.f32 %v1713_v52, %v181_v22  ;;  %v1715_v56 = vpop.f32.mrb[33].mxu0 }
 0xe5c   :  { %v1721_v54 = vadd.f32 %v1715_v56, %v183_v48  ;;  %v1717_v59 = vpop.f32.mrb[34].mxu0 }
 0xe5d   :  { %v1987_v10 = vmul.f32 -1.442695, %v1720_v44  ;;  %v1718_v31 = vpop.f32.mrb[35].mxu0 }
 0xe5e   :  { %v1988_v11 = vmul.f32 -1.442695, %v1721_v54  ;;  %v14_v31 = vstv %s3112_s8 }
 0xe5f   :  { %2243 = vpow2.f32 %v1987_v10  ;;  %15 = vst [vmem:[#allocation3] sm:$0x1] %v14_v31 }
 0xe60   :  { %2245 = vpow2.f32 %v1988_v11 }
 0xe61   :  { %2247 = vtanh.f32 %v1721_v54 }
 0xe69   :  { %v2244_v32 = vpop.eup %2243 }
 0xe6a   :  { %v2246_v49 = vpop.eup %2245  ;;  %v1725_v43 = vadd.f32 1.0, %v2244_v32 }
 0xe6b   :  { %v1732_v33 = vadd.f32 1.0, %v2246_v49  ;;  %v2248_v35 = vpop.eup %2247 }
 0xe6d   :  { %2249 = vrcp.f32 %v1732_v33 }
 0xe6e   :  { %2251 = vrcp.f32 %v1725_v43 }
 0xe77   :  { %v2250_v36 = vpop.eup %2249 }
 0xe78   :  { %v2252_v37 = vpop.eup %2251  ;;  %v1735_v38 = vsel %vm65_vm1, %v2248_v35, %v2250_v36  ;;  %v1994_v35 = vld [vmem:[#allocation3] ss:$0 sm:$0xff] }
 0xe79   :  { %v1737_v39 = vmul.f32 %v2252_v37, %v1735_v38  ;;  %v1736_v12 = vmul.f32 %v2252_v37, %v3022_v21 }
 0xe7b   :  { %1739 = vrot.lane.b32.xlu1 %v1737_v39, %s2308_s3 }
 0xeb8   :  { %v1641_v34 = vpop.f32.mrb[36].mxu1 }
 0xeb9   :  { %v2010_v45 = vadd.f32 %v1641_v34, %v2637_v50  ;;  %v1643_v47 = vpop.f32.mrb[37].mxu1 }
 0xeba   :  { %v2011_v40 = vadd.f32 %v1643_v47, %v2641_v51  ;;  %v1645_v6 = vpop.f32.mrb[38].mxu1 }
 0xebb   :  { %v1984_v7 = vmul.f32 -1.442695, %v2010_v45  ;;  %v1646_v60 = vpop.f32.mrb[39].mxu1 }
 0xebc   :  { %v1985_v8 = vmul.f32 -1.442695, %v2011_v40 }
 0xebd   :  { %2253 = vpow2.f32 %v1984_v7 }
 0xebe   :  { %2255 = vpow2.f32 %v1985_v8 }
 0xebf   :  { %2257 = vtanh.f32 %v2011_v40 }
 0xec7   :  { %v2254_v9 = vpop.eup %2253 }
 0xec8   :  { %v2256_v41 = vpop.eup %2255  ;;  %v1653_v14 = vadd.f32 1.0, %v2254_v9 }
 0xec9   :  { %v1660_v42 = vadd.f32 1.0, %v2256_v41  ;;  %v2258_v17 = vpop.eup %2257 }
 0xecb   :  { %2259 = vrcp.f32 %v1660_v42 }
 0xecc   :  { %2261 = vrcp.f32 %v1653_v14 }
 0xed5   :  { %v2260_v19 = vpop.eup %2259 }
 0xed6   :  { %v2262_v46 = vpop.eup %2261  ;;  %v1663_v29 = vsel %vm65_vm1, %v2258_v17, %v2260_v19 }
 0xed7   :  { %v1665_v24 = vmul.f32 %v2262_v46, %v1663_v29  ;;  %v1664_v26 = vmul.f32 %v2262_v46, %v3027_v2 }
 0xed9   :  { %1667 = vrot.lane.b32.xlu0 %v1665_v24, %s2308_s3 }
 0xeed   :  { %v1740_v13 = vpop.permute.xlu1 %1739 }
 0xeee   :  { %v1742_v16 = vadd.f32 %v1740_v13, %v1736_v12 }
 0xef0   :  { %2263 = vtanh.f32 %v1742_v16 }
 0xefa   :  { %v2264_v20 = vpop.eup %2263 }
 0xefb   :  { %v1744_v62 = vmul.f32 %v2264_v20, %v1735_v38 }
 0xefd   :  { %v1792_v61 = vpack.c.bf16 %v1744_v62, %v1744_v62 }
 0xeff   :  { %1794 = vrot.lane.b32.xlu1 %v1792_v61, %s2308_s3 }
 0xf4b   :  { %v1668_v27 = vpop.permute.xlu0 %1667 }
 0xf4c   :  { %v1670_v63 = vadd.f32 %v1668_v27, %v1664_v26 }
 0xf4e   :  { %2265 = vtanh.f32 %v1670_v63 }
 0xf58   :  { %v2266_v0 = vpop.eup %2265 }
 0xf59   :  { %v1672_v3 = vmul.f32 %v2266_v0, %v1663_v29 }
 0xf5b   :  { %v1673_v4 = vpack.c.bf16 %v1672_v3, %v1672_v3 }
 0xf5d   :  { %1746 = vrot.lane.b32.xlu0 %v1673_v4, %s2308_s3 }
 0xf71   :  { %v1795_v21 = vpop.permute.xlu1 %1794 }
 0xfcf   :  { %v1747_v28 = vpop.permute.xlu0 %1746 }
 0xfd0   :  { %1989 = vmatmul.mubr.msk.bf16.vlgmr.msra.gmra.mrb[36].mxu0 %vm246_vm2, %v1747_v28 }
 0xfd1   :  { %1800 = vmatpush1.bf16.msra.mxu0 %v2966_v23  ;;  %1831 = vmatprep.mubr.bf16.mxu0 %v2307_v1  ;;  %v1993_v23 = vld [vmem:[%s3111_s7] ss:$0 sm:$0xff] }
 0xfd2   :  { %1801 = vmatprep.subr.bf16.mxu0 %v2973_v55  ;;  %1871 = vrot.lane.b32.xlu1 %v1993_v23, %s2308_s3 }
 0xfd5   :  { %1802 = vmatpush1.bf16.msra.mxu0 %v2979_v25 }
 0xfd6   :  { %1803 = vmatprep.subr.bf16.mxu0 %v2985_v57 }
 0xfd9   :  { %1804 = vmatpush1.bf16.msra.mxu0 %v2991_v58 }
 0xfda   :  { %1805 = vmatprep.subr.bf16.mxu0 %v3051_v30 }
 0xfdd   :  { %1806 = vmatpush1.bf16.msra.mxu0 %v3057_v18 }
 0xfe0   :  { %1990 = vmatmul.mubr.msk.bf16.vlgmr.msra.gmra.mrb[36].mxu0 %vm246_vm2, %v1795_v21 }
0x1044   :  { %v1872_v32 = vpop.permute.xlu1 %1871 }
0x10b3   :  { %v1833_v1 = vpop.f32.mrb[36].mxu0 }
0x10b4   :  { %v2012_v55 = vadd.f32 %v1833_v1, %v2637_v50  ;;  %v1835_v25 = vpop.f32.mrb[37].mxu0 }
0x10b5   :  { %v2013_v57 = vadd.f32 %v1835_v25, %v2641_v51  ;;  %v1837_v58 = vpop.f32.mrb[38].mxu0 }
0x10b6   :  { %v1991_v2 = vmul.f32 -1.442695, %v2012_v55  ;;  %v1838_v5 = vpop.f32.mrb[39].mxu0 }
0x10b7   :  { %v1992_v15 = vmul.f32 -1.442695, %v2013_v57 }
0x10b8   :  { %2267 = vpow2.f32 %v1991_v2 }
0x10b9   :  { %2269 = vpow2.f32 %v1992_v15 }
0x10ba   :  { %2271 = vtanh.f32 %v2013_v57 }
0x10c2   :  { %v2268_v30 = vpop.eup %2267 }
0x10c3   :  { %v2270_v18 = vpop.eup %2269  ;;  %v1845_v22 = vadd.f32 1.0, %v2268_v30 }
0x10c4   :  { %v1852_v48 = vadd.f32 1.0, %v2270_v18  ;;  %v2272_v52 = vpop.eup %2271 }
0x10c6   :  { %2273 = vrcp.f32 %v1852_v48 }
0x10c7   :  { %2275 = vrcp.f32 %v1845_v22 }
0x10d0   :  { %v2274_v44 = vpop.eup %2273 }
0x10d1   :  { %v2276_v56 = vpop.eup %2275  ;;  %v1855_v50 = vsel %vm65_vm1, %v2272_v52, %v2274_v44 }
0x10d2   :  { %v1857_v51 = vmul.f32 %v2276_v56, %v1855_v50  ;;  %v1856_v54 = vmul.f32 %v2276_v56, %v1670_v63 }
0x10d4   :  { %1859 = vrot.lane.b32.xlu0 %v1857_v51, %s2308_s3 }
0x1146   :  { %v1860_v59 = vpop.permute.xlu0 %1859 }
0x1147   :  { %v1862_v10 = vadd.f32 %v1860_v59, %v1856_v54 }
0x1149   :  { %2277 = vtanh.f32 %v1862_v10 }
0x1153   :  { %v2278_v11 = vpop.eup %2277 }
0x1154   :  { %v1864_v49 = vmul.f32 %v2278_v11, %v1855_v50 }
0x1156   :  { %v1874_v43 = vmul.f32 %v1872_v32, %v1864_v49 }
0x1158   :  { %1876 = vrot.lane.b32.xlu0 %v1874_v43, %s2308_s3 }
0x11ca   :  { %v1877_v53 = vpop.permute.xlu0 %1876 }
0x11cb   :  { %v1879_v33 = vsel %vm246_vm2, %v1877_v53, 0.0 }
0x11cc   :  { %1880 = vadd.xlane.f32.xlu1 %v1879_v33 }
0x1259   :  { %v1881_v36 = vpop.xlane.xlu1 %1880 }
0x125a   :  { %v1889_v37 = vadd.f32 %v1994_v35, %v1881_v36 }
0x125c   :  { %v1995_v38 = vmul.f32 -1.442695, %v1889_v37 }
0x125e   :  { %2279 = vpow2.f32 %v1995_v38 }
0x1268   :  { %v2280_v39 = vpop.eup %2279 }
0x1269   :  { %v1893_v34 = vadd.f32 1.0, %v2280_v39 }
0x126b   :  { %2281 = vrcp.f32 %v1893_v34 }
0x1275   :  { %v2282_v45 = vpop.eup %2281 }
0x1276   :  { %1897 = vst.msk [vmem:[%s3113_s9] sm:$0xff] %vm1896_vm3, %v2282_v45 }

</bundles_post_ra>
